<compile_context>
chip_gen: v5e
topology: v5e:2x2
jax: 0.10.0
libtpu: 0.0.40
codegen_flags: <defaults>
</compile_context>

<pallas_src>
import jax
import jax.numpy as jnp
from jax import lax
from jax.experimental import pallas as pl
from jax.experimental.pallas import tpu as pltpu


def _multiscale_kernel(x_ref, wk_ref, w3_ref, bias_ref, out_ref,
                       xpad_ref, xw_ref):
    """One batch image per grid step.

    x_ref   : (1, H, W, Cin)    unpadded NHWC input block
    wk_ref  : (5, 5*Cin, F)     fused conv1/conv2 weights (BN scale folded),
                                wk[kh][kw*Cin + c, f]
    w3_ref  : (F, F)            1x1 conv weights (BN3 scale folded)
    bias_ref: (2, F)            row 0 = fused BN1/BN2 bias, row 1 = BN3 bias
    out_ref : (1, H*W, F)
    xpad_ref: (H+4, W+4, Cin)   VMEM scratch: zero-padded halo block
    xw_ref  : (H+4, W, 5*Cin)   VMEM scratch: kw-im2col of the padded block
    """
    _, H, W, Cin = x_ref.shape
    F = w3_ref.shape[-1]
    K = 5            # fused tap extent (3x3 lives inside the 5x5 tap grid)
    PAD = 2

    # ---- halo padding in VMEM (no wrapper-side jnp.pad / extra HBM pass).
    # Zeroed every step so the kernel stays correct under megacore sharding.
    xpad_ref[...] = jnp.zeros_like(xpad_ref)
    xpad_ref[PAD:PAD + H, PAD:PAD + W, :] = x_ref[0]

    # ---- kw-im2col: do the 5 unaligned horizontal shifts exactly once.
    xw_ref[...] = jnp.concatenate(
        [xpad_ref[:, kw:kw + W, :] for kw in range(K)], axis=-1)

    # ---- fused 3x3 + 5x5 branches: 5 aligned vertical taps, K-dim = 5*Cin,
    # accumulated in f32 on the MXU. BN1/BN2 scales are folded into wk.
    acc = jnp.zeros((H * W, F), jnp.float32)
    for kh in range(K):
        patch = xw_ref[kh:kh + H, :, :].reshape(H * W, K * Cin)
        acc = acc + jnp.dot(patch, wk_ref[kh],
                            preferred_element_type=jnp.float32)
    y12 = jnp.maximum(acc + bias_ref[0:1, :], 0.0)            # (H*W, F)

    # ---- 1x1 conv over channels (BN3 scale folded into w3) + bias + ReLU.
    y3 = jnp.dot(y12.astype(w3_ref.dtype), w3_ref[...],
                 preferred_element_type=jnp.float32)
    y3 = jnp.maximum(y3 + bias_ref[1:2, :], 0.0)              # (H*W, F)

    out_ref[0] = y3.astype(out_ref.dtype)


def multiscale_convblock(x_nchw, params, *, compute_dtype=jnp.float32):
    """Eval-mode Multiscale_ConvBlock. x_nchw: (B, Cin, H, W) -> (B, F, H, W).

    compute_dtype: dtype of the activations/weights fed to the MXU
    (accumulation is always f32). bfloat16 halves HBM/VMEM traffic and doubles
    the MXU rate on v6e/v7x at ~1e-2 absolute error; float32 (default) matches
    the reference to ~1e-6 and is what the self-test below checks.
    """
    eps = 1e-5
    x = jnp.transpose(x_nchw, (0, 2, 3, 1))                   # NCHW -> NHWC
    B, H, W, Cin = x.shape

    w1, b1 = params["w1"], params["b1"]                       # (3,3,Cin,Ch),(Ch,)
    w2, b2 = params["w2"], params["b2"]                       # (5,5,Cin,Ch),(Ch,)
    w3, b3 = params["w3"], params["b3"]                       # (F,F),(F,)
    Ch = w1.shape[-1]
    F = w3.shape[-1]

    def fold_bn(gamma, beta, mean, var, conv_bias):
        scale = gamma / jnp.sqrt(var + eps)
        bias = beta + scale * (conv_bias - mean)
        return scale.astype(jnp.float32), bias.astype(jnp.float32)

    s1, bb1 = fold_bn(*params["bn1"], b1)
    s2, bb2 = fold_bn(*params["bn2"], b2)
    s3, bb3 = fold_bn(*params["bn3"], b3)

    # Fuse the two branches: zero-pad conv1's 3x3 taps into the 5x5 tap grid and
    # concatenate with conv2 along Cout; fold the BN scales into the weights.
    w1p = jnp.zeros((5, 5, Cin, Ch), jnp.float32).at[1:4, 1:4].set(w1)
    wf = jnp.concatenate([w1p * s1, w2 * s2], axis=-1)        # (5,5,Cin,F)
    wk = wf.reshape(5, 5 * Cin, F).astype(compute_dtype)      # row = kw*Cin + c
    w3f = (w3 * s3).astype(compute_dtype)                     # (F,F)
    bias = jnp.stack([jnp.concatenate([bb1, bb2]),
                      bb3]).astype(jnp.float32)               # (2,F)

    xin = x.astype(compute_dtype)

    out = pl.pallas_call(
        _multiscale_kernel,
        out_shape=jax.ShapeDtypeStruct((B, H * W, F), jnp.float32),
        grid_spec=pltpu.PrefetchScalarGridSpec(
            num_scalar_prefetch=0,
            grid=(B,),                                        # one image / step
            in_specs=[
                pl.BlockSpec((1, H, W, Cin), lambda b: (b, 0, 0, 0)),
                pl.BlockSpec((5, 5 * Cin, F), lambda b: (0, 0, 0)),
                pl.BlockSpec((F, F), lambda b: (0, 0)),
                pl.BlockSpec((2, F), lambda b: (0, 0)),
            ],
            out_specs=pl.BlockSpec((1, H * W, F), lambda b: (b, 0, 0)),
            scratch_shapes=[
                pltpu.VMEM((H + 4, W + 4, Cin), compute_dtype),   # halo block
                pltpu.VMEM((H + 4, W, 5 * Cin), compute_dtype),   # kw-im2col
            ],
        ),
        compiler_params=pltpu.CompilerParams(
            dimension_semantics=("parallel",),                # megacore on batch
            vmem_limit_bytes=32 * 1024 * 1024,                # headroom on v5e
        ),
    )(xin, wk, w3f, bias)

    return jnp.transpose(out.reshape(B, H, W, F), (0, 3, 1, 2))   # -> NCHW


# ---------------------------- pure-JAX reference ----------------------------
def _reference(x_nchw, params):
    eps = 1e-5
    x = jnp.transpose(x_nchw, (0, 2, 3, 1))  # NHWC
    dn = ("NHWC", "HWIO", "NHWC")

    def conv_bn_relu(inp, w, b, bn, pad):
        y = lax.conv_general_dilated(inp, w, (1, 1),
                                     ((pad, pad), (pad, pad)),
                                     dimension_numbers=dn) + b
        gamma, beta, mean, var = bn
        y = (y - mean) / jnp.sqrt(var + eps) * gamma + beta
        return jnp.maximum(y, 0.0)

    x1 = conv_bn_relu(x, params["w1"], params["b1"], params["bn1"], 1)
    x2 = conv_bn_relu(x, params["w2"], params["b2"], params["bn2"], 2)
    y = jnp.concatenate([x1, x2], axis=-1)
    w3 = params["w3"].reshape(1, 1, *params["w3"].shape)          # (1,1,F,F) HWIO
    y = conv_bn_relu(y, w3, params["b3"], params["bn3"], 0)
    return jnp.transpose(y, (0, 3, 1, 2))


if __name__ == "__main__":
    B, Cin, H, W = 2, 4, 16, 16
    cnn_filters = 8
    Ch = cnn_filters // 2

    key = jax.random.PRNGKey(0)
    ks = jax.random.split(key, 12)

    def bn_params(k, c):
        k1, k2, k3, k4 = jax.random.split(k, 4)
        gamma = 1.0 + 0.1 * jax.random.normal(k1, (c,), jnp.float32)
        beta = 0.1 * jax.random.normal(k2, (c,), jnp.float32)
        mean = 0.05 * jax.random.normal(k3, (c,), jnp.float32)
        var = 1.0 + 0.1 * jax.nn.softplus(jax.random.normal(k4, (c,), jnp.float32))
        return (gamma, beta, mean, var)

    params = {
        "w1": 0.1 * jax.random.normal(ks[0], (3, 3, Cin, Ch), jnp.float32),
        "b1": 0.05 * jax.random.normal(ks[1], (Ch,), jnp.float32),
        "w2": 0.1 * jax.random.normal(ks[2], (5, 5, Cin, Ch), jnp.float32),
        "b2": 0.05 * jax.random.normal(ks[3], (Ch,), jnp.float32),
        "w3": 0.1 * jax.random.normal(ks[4], (cnn_filters, cnn_filters), jnp.float32),
        "b3": 0.05 * jax.random.normal(ks[5], (cnn_filters,), jnp.float32),
        "bn1": bn_params(ks[6], Ch),
        "bn2": bn_params(ks[7], Ch),
        "bn3": bn_params(ks[8], cnn_filters),
    }

    x = jax.random.normal(ks[9], (B, Cin, H, W), jnp.float32)

    out = jax.block_until_ready(multiscale_convblock(x, params))
    ref = jax.block_until_ready(_reference(x, params))

    assert out.shape == (B, cnn_filters, H, W), out.shape
    max_err = float(jnp.max(jnp.abs(out - ref)))
    assert jnp.allclose(out, ref, atol=1e-4, rtol=1e-4), max_err

    print("KERNEL_OK")
</pallas_src>

<mosaic_0001>
module attributes {stable_mosaic.version = 11 : i64} {
  func.func @_multiscale_kernel(%arg0: i32, %arg1: memref<1x16x16x4xf32, #tpu.memory_space<vmem>>, %arg2: memref<5x20x8xf32, #tpu.memory_space<vmem>>, %arg3: memref<8x8xf32, #tpu.memory_space<vmem>>, %arg4: memref<2x8xf32, #tpu.memory_space<vmem>>, %arg5: memref<1x256x8xf32, #tpu.memory_space<vmem>>, %arg6: memref<20x20x4xf32, #tpu.memory_space<vmem>>, %arg7: memref<20x16x20xf32, #tpu.memory_space<vmem>>) attributes {dimension_semantics = [#tpu.dimension_semantics<parallel>], iteration_bounds = array<i64: 2>, scalar_prefetch = 0 : i64, scratch_operands = 2 : i64, tpu.core_type = #tpu.core_type<tc>, window_params = [{transform_indices = @transform_0, window_bounds = array<i64: 1, 16, 16, 4>}, {pipeline_mode = #tpu.pipeline_mode<synchronous>, transform_indices = @transform_1, window_bounds = array<i64: 5, 20, 8>}, {pipeline_mode = #tpu.pipeline_mode<synchronous>, transform_indices = @transform_2, window_bounds = array<i64: 8, 8>}, {pipeline_mode = #tpu.pipeline_mode<synchronous>, transform_indices = @transform_3, window_bounds = array<i64: 2, 8>}, {transform_indices = @transform_4, window_bounds = array<i64: 1, 256, 8>}]} {
    %cst = arith.constant 0.000000e+00 : f32
    %0 = vector.broadcast %cst : f32 to vector<20x20x4xf32>
    %c0 = arith.constant 0 : index
    %c0_0 = arith.constant 0 : index
    %c0_1 = arith.constant 0 : index
    %1 = vector.load %arg6[%c0, %c0_0, %c0_1] : memref<20x20x4xf32, #tpu.memory_space<vmem>>, vector<20x20x4xf32>
    tpu.vector_store %arg6[%c0, %c0_0, %c0_1], %0 {strides = array<i32>} : memref<20x20x4xf32, #tpu.memory_space<vmem>>, vector<20x20x4xf32>,
    %c0_2 = arith.constant 0 : index
    %c0_3 = arith.constant 0 : index
    %c0_4 = arith.constant 0 : index
    %c0_5 = arith.constant 0 : index
    %2 = vector.load %arg1[%c0_2, %c0_3, %c0_4, %c0_5] : memref<1x16x16x4xf32, #tpu.memory_space<vmem>>, vector<1x16x16x4xf32>
    %3 = vector.shape_cast %2 : vector<1x16x16x4xf32> to vector<16x16x4xf32>
    %c2 = arith.constant 2 : index
    %c2_6 = arith.constant 2 : index
    %c0_7 = arith.constant 0 : index
    %4 = vector.load %arg6[%c2, %c2_6, %c0_7] : memref<20x20x4xf32, #tpu.memory_space<vmem>>, vector<16x16x4xf32>
    tpu.vector_store %arg6[%c2, %c2_6, %c0_7], %3 {strides = array<i32>} : memref<20x20x4xf32, #tpu.memory_space<vmem>>, vector<16x16x4xf32>,
    %c0_8 = arith.constant 0 : index
    %c0_9 = arith.constant 0 : index
    %c0_10 = arith.constant 0 : index
    %5 = vector.load %arg6[%c0_8, %c0_9, %c0_10] : memref<20x20x4xf32, #tpu.memory_space<vmem>>, vector<20x16x4xf32>
    %c0_11 = arith.constant 0 : index
    %c1 = arith.constant 1 : index
    %c0_12 = arith.constant 0 : index
    %6 = vector.load %arg6[%c0_11, %c1, %c0_12] : memref<20x20x4xf32, #tpu.memory_space<vmem>>, vector<20x16x4xf32>
    %c0_13 = arith.constant 0 : index
    %c2_14 = arith.constant 2 : index
    %c0_15 = arith.constant 0 : index
    %7 = vector.load %arg6[%c0_13, %c2_14, %c0_15] : memref<20x20x4xf32, #tpu.memory_space<vmem>>, vector<20x16x4xf32>
    %c0_16 = arith.constant 0 : index
    %c3 = arith.constant 3 : index
    %c0_17 = arith.constant 0 : index
    %8 = vector.load %arg6[%c0_16, %c3, %c0_17] : memref<20x20x4xf32, #tpu.memory_space<vmem>>, vector<20x16x4xf32>
    %c0_18 = arith.constant 0 : index
    %c4 = arith.constant 4 : index
    %c0_19 = arith.constant 0 : index
    %9 = vector.load %arg6[%c0_18, %c4, %c0_19] : memref<20x20x4xf32, #tpu.memory_space<vmem>>, vector<20x16x4xf32>
    %10 = tpu.concatenate %5, %6, %7, %8, %9 in 2 : vector<20x16x4xf32>, vector<20x16x4xf32>, vector<20x16x4xf32>, vector<20x16x4xf32>, vector<20x16x4xf32> -> vector<20x16x20xf32>
    %c0_20 = arith.constant 0 : index
    %c0_21 = arith.constant 0 : index
    %c0_22 = arith.constant 0 : index
    %11 = vector.load %arg7[%c0_20, %c0_21, %c0_22] : memref<20x16x20xf32, #tpu.memory_space<vmem>>, vector<20x16x20xf32>
    tpu.vector_store %arg7[%c0_20, %c0_21, %c0_22], %10 {strides = array<i32>} : memref<20x16x20xf32, #tpu.memory_space<vmem>>, vector<20x16x20xf32>,
    %cst_23 = arith.constant 0.000000e+00 : f32
    %12 = vector.broadcast %cst_23 : f32 to vector<256x8xf32>
    %c0_24 = arith.constant 0 : index
    %c0_25 = arith.constant 0 : index
    %c0_26 = arith.constant 0 : index
    %13 = vector.load %arg7[%c0_24, %c0_25, %c0_26] : memref<20x16x20xf32, #tpu.memory_space<vmem>>, vector<16x16x20xf32>
    %14 = vector.shape_cast %13 : vector<16x16x20xf32> to vector<256x20xf32>
    %c0_27 = arith.constant 0 : index
    %c0_28 = arith.constant 0 : index
    %c0_29 = arith.constant 0 : index
    %15 = vector.load %arg2[%c0_27, %c0_28, %c0_29] : memref<5x20x8xf32, #tpu.memory_space<vmem>>, vector<1x20x8xf32>
    %16 = vector.shape_cast %15 : vector<1x20x8xf32> to vector<20x8xf32>
    %cst_30 = arith.constant dense<0.000000e+00> : vector<256x8xf32>
    %17 = tpu.matmul %14, %16, %cst_30 {dimension_numbers = #tpu.dot_dimension_numbers<[1], [0], [0], [1], [0, 0, 1, 1], [], []>} : vector<256x20xf32>, vector<20x8xf32>, vector<256x8xf32> -> vector<256x8xf32>
    %18 = arith.addf %12, %17 : vector<256x8xf32>
    %c1_31 = arith.constant 1 : index
    %c0_32 = arith.constant 0 : index
    %c0_33 = arith.constant 0 : index
    %19 = vector.load %arg7[%c1_31, %c0_32, %c0_33] : memref<20x16x20xf32, #tpu.memory_space<vmem>>, vector<16x16x20xf32>
    %20 = vector.shape_cast %19 : vector<16x16x20xf32> to vector<256x20xf32>
    %c1_34 = arith.constant 1 : index
    %c0_35 = arith.constant 0 : index
    %c0_36 = arith.constant 0 : index
    %21 = vector.load %arg2[%c1_34, %c0_35, %c0_36] : memref<5x20x8xf32, #tpu.memory_space<vmem>>, vector<1x20x8xf32>
    %22 = vector.shape_cast %21 : vector<1x20x8xf32> to vector<20x8xf32>
    %cst_37 = arith.constant dense<0.000000e+00> : vector<256x8xf32>
    %23 = tpu.matmul %20, %22, %cst_37 {dimension_numbers = #tpu.dot_dimension_numbers<[1], [0], [0], [1], [0, 0, 1, 1], [], []>} : vector<256x20xf32>, vector<20x8xf32>, vector<256x8xf32> -> vector<256x8xf32>
    %24 = arith.addf %18, %23 : vector<256x8xf32>
    %c2_38 = arith.constant 2 : index
    %c0_39 = arith.constant 0 : index
    %c0_40 = arith.constant 0 : index
    %25 = vector.load %arg7[%c2_38, %c0_39, %c0_40] : memref<20x16x20xf32, #tpu.memory_space<vmem>>, vector<16x16x20xf32>
    %26 = vector.shape_cast %25 : vector<16x16x20xf32> to vector<256x20xf32>
    %c2_41 = arith.constant 2 : index
    %c0_42 = arith.constant 0 : index
    %c0_43 = arith.constant 0 : index
    %27 = vector.load %arg2[%c2_41, %c0_42, %c0_43] : memref<5x20x8xf32, #tpu.memory_space<vmem>>, vector<1x20x8xf32>
    %28 = vector.shape_cast %27 : vector<1x20x8xf32> to vector<20x8xf32>
    %cst_44 = arith.constant dense<0.000000e+00> : vector<256x8xf32>
    %29 = tpu.matmul %26, %28, %cst_44 {dimension_numbers = #tpu.dot_dimension_numbers<[1], [0], [0], [1], [0, 0, 1, 1], [], []>} : vector<256x20xf32>, vector<20x8xf32>, vector<256x8xf32> -> vector<256x8xf32>
    %30 = arith.addf %24, %29 : vector<256x8xf32>
    %c3_45 = arith.constant 3 : index
    %c0_46 = arith.constant 0 : index
    %c0_47 = arith.constant 0 : index
    %31 = vector.load %arg7[%c3_45, %c0_46, %c0_47] : memref<20x16x20xf32, #tpu.memory_space<vmem>>, vector<16x16x20xf32>
    %32 = vector.shape_cast %31 : vector<16x16x20xf32> to vector<256x20xf32>
    %c3_48 = arith.constant 3 : index
    %c0_49 = arith.constant 0 : index
    %c0_50 = arith.constant 0 : index
    %33 = vector.load %arg2[%c3_48, %c0_49, %c0_50] : memref<5x20x8xf32, #tpu.memory_space<vmem>>, vector<1x20x8xf32>
    %34 = vector.shape_cast %33 : vector<1x20x8xf32> to vector<20x8xf32>
    %cst_51 = arith.constant dense<0.000000e+00> : vector<256x8xf32>
    %35 = tpu.matmul %32, %34, %cst_51 {dimension_numbers = #tpu.dot_dimension_numbers<[1], [0], [0], [1], [0, 0, 1, 1], [], []>} : vector<256x20xf32>, vector<20x8xf32>, vector<256x8xf32> -> vector<256x8xf32>
    %36 = arith.addf %30, %35 : vector<256x8xf32>
    %c4_52 = arith.constant 4 : index
    %c0_53 = arith.constant 0 : index
    %c0_54 = arith.constant 0 : index
    %37 = vector.load %arg7[%c4_52, %c0_53, %c0_54] : memref<20x16x20xf32, #tpu.memory_space<vmem>>, vector<16x16x20xf32>
    %38 = vector.shape_cast %37 : vector<16x16x20xf32> to vector<256x20xf32>
    %c4_55 = arith.constant 4 : index
    %c0_56 = arith.constant 0 : index
    %c0_57 = arith.constant 0 : index
    %39 = vector.load %arg2[%c4_55, %c0_56, %c0_57] : memref<5x20x8xf32, #tpu.memory_space<vmem>>, vector<1x20x8xf32>
    %40 = vector.shape_cast %39 : vector<1x20x8xf32> to vector<20x8xf32>
    %cst_58 = arith.constant dense<0.000000e+00> : vector<256x8xf32>
    %41 = tpu.matmul %38, %40, %cst_58 {dimension_numbers = #tpu.dot_dimension_numbers<[1], [0], [0], [1], [0, 0, 1, 1], [], []>} : vector<256x20xf32>, vector<20x8xf32>, vector<256x8xf32> -> vector<256x8xf32>
    %42 = arith.addf %36, %41 : vector<256x8xf32>
    %c0_59 = arith.constant 0 : index
    %c0_60 = arith.constant 0 : index
    %43 = vector.load %arg4[%c0_59, %c0_60] : memref<2x8xf32, #tpu.memory_space<vmem>>, vector<1x8xf32>
    %44 = vector.broadcast %43 : vector<1x8xf32> to vector<256x8xf32>
    %45 = arith.addf %42, %44 : vector<256x8xf32>
    %cst_61 = arith.constant 0.000000e+00 : f32
    %46 = vector.broadcast %cst_61 : f32 to vector<256x8xf32>
    %47 = arith.maximumf %45, %46 : vector<256x8xf32>
    %c0_62 = arith.constant 0 : index
    %c0_63 = arith.constant 0 : index
    %48 = vector.load %arg3[%c0_62, %c0_63] : memref<8x8xf32, #tpu.memory_space<vmem>>, vector<8x8xf32>
    %cst_64 = arith.constant dense<0.000000e+00> : vector<256x8xf32>
    %49 = tpu.matmul %47, %48, %cst_64 {dimension_numbers = #tpu.dot_dimension_numbers<[1], [0], [0], [1], [0, 0, 1, 1], [], []>} : vector<256x8xf32>, vector<8x8xf32>, vector<256x8xf32> -> vector<256x8xf32>
    %c1_65 = arith.constant 1 : index
    %c0_66 = arith.constant 0 : index
    %50 = vector.load %arg4[%c1_65, %c0_66] : memref<2x8xf32, #tpu.memory_space<vmem>>, vector<1x8xf32>
    %51 = vector.broadcast %50 : vector<1x8xf32> to vector<256x8xf32>
    %52 = arith.addf %49, %51 : vector<256x8xf32>
    %cst_67 = arith.constant 0.000000e+00 : f32
    %53 = vector.broadcast %cst_67 : f32 to vector<256x8xf32>
    %54 = arith.maximumf %52, %53 : vector<256x8xf32>
    %c0_68 = arith.constant 0 : index
    %c0_69 = arith.constant 0 : index
    %c0_70 = arith.constant 0 : index
    %55 = vector.load %arg5[%c0_68, %c0_69, %c0_70] : memref<1x256x8xf32, #tpu.memory_space<vmem>>, vector<1x256x8xf32>
    %56 = vector.shape_cast %55 : vector<1x256x8xf32> to vector<256x8xf32>
    %57 = vector.shape_cast %54 : vector<256x8xf32> to vector<1x256x8xf32>
    tpu.vector_store %arg5[%c0_68, %c0_69, %c0_70], %57 {strides = array<i32>} : memref<1x256x8xf32, #tpu.memory_space<vmem>>, vector<1x256x8xf32>,
    return
  }
  func.func @transform_0(%arg0: i32) -> (i32, i32, i32, i32) {
    %c0_i32 = arith.constant 0 : i32
    %c0_i32_0 = arith.constant 0 : i32
    %c0_i32_1 = arith.constant 0 : i32
    %c0_i32_2 = arith.constant 0 : i32
    return %arg0, %c0_i32, %c0_i32_0, %c0_i32_1 : i32, i32, i32, i32
  }
  func.func @transform_1(%arg0: i32) -> (i32, i32, i32) {
    %c0_i32 = arith.constant 0 : i32
    %c0_i32_0 = arith.constant 0 : i32
    %c0_i32_1 = arith.constant 0 : i32
    %c0_i32_2 = arith.constant 0 : i32
    return %c0_i32, %c0_i32_0, %c0_i32_1 : i32, i32, i32
  }
  func.func @transform_2(%arg0: i32) -> (i32, i32) {
    %c0_i32 = arith.constant 0 : i32
    %c0_i32_0 = arith.constant 0 : i32
    %c0_i32_1 = arith.constant 0 : i32
    return %c0_i32, %c0_i32_0 : i32, i32
  }
  func.func @transform_3(%arg0: i32) -> (i32, i32) {
    %c0_i32 = arith.constant 0 : i32
    %c0_i32_0 = arith.constant 0 : i32
    %c0_i32_1 = arith.constant 0 : i32
    return %c0_i32, %c0_i32_0 : i32, i32
  }
  func.func @transform_4(%arg0: i32) -> (i32, i32, i32) {
    %c0_i32 = arith.constant 0 : i32
    %c0_i32_0 = arith.constant 0 : i32
    %c0_i32_1 = arith.constant 0 : i32
    return %arg0, %c0_i32, %c0_i32_0 : i32, i32, i32
  }
}

</mosaic_0001>

<bundles_post_ra>
// kernel: tpu_custom_call.1
= control target key start
LH: loop header
LB: loop body
LE: loop exit
PB: predicated region body
PF: predicated region fallthrough
CT: control target
= control target key end

     0   :  { %s3387_s15 = smov 0   ;;  %s4811_s0 = inlined_call_operand.vmem [shape: f32[2,16,16,4], index: 0, kind: input, shape index: {}]   ;;  %s4812_s1 = inlined_call_operand.vmem [shape: f32[5,20,8], index: 1, kind: input, shape index: {}]   ;;  %s4813_s2 = inlined_call_operand.vmem [shape: f32[8,8], index: 2, kind: input, shape index: {}]   ;;  %s4814_s3 = inlined_call_operand.vmem [shape: f32[2,8], index: 3, kind: input, shape index: {}]   ;;  %s4815_s4 = inlined_call_operand.vmem [shape: f32[2,256,8], index: 4, kind: output, shape index: {}]  }
   0x1 LB: > { %s3106_s16 = sadd.s32 4294967295, %s3355_s15   ;;  %p3110_p0 = scmp.ge.s32.totalorder %s3355_s15, 1  ;;  %s3355_s15 = sphi %s3387_s15, %s14_s15  }
   0x2   : > { %p162_p1 = scmp.lt.s32.totalorder %s3355_s15, 3 }
   0x4   : > { %p163_p2 = pnand %p3110_p0, %p162_p1 }
   0x6   : > { %166 = sbr.rel (%p163_p2) target bundleno = 1060 (0x424), region = 36 }
   0xb   : > { %p188_p3 = scmp.lt.s32.totalorder %s3106_s16, 1  ;;  %vm198_vm0 = vcmask 31744   ;;  %v3357_v0 = vmov 0.0   ;;  %s3358_s21 = smov 4   ;;  %vm201_vm1 = vcmask 27648   ;;  %vm1537_vm2 = vcmask 1043456  }
   0xc   : > { %227 = vst.msk [vmem:[#allocation2 + $0xd8] sm:$0xff] %vm198_vm0, %v3357_v0  ;;  %s3359_s22 = smov 8   ;;  %s3360_s23 = smov 12   ;;  %v3117_v55 = vld [vmem:[%s4812_s1 + $0x28] sm:$0xf]  ;;  %v3116_v57 = vld [vmem:[%s4812_s1 + $0x20] sm:$0xff] }
   0xd   : > { %s4845_s16 = smov (!%p188_p3, %s3106_s16), 1  ;;  %228 = vst.msk [vmem:[#allocation2 + $0xe0] sm:$0xff] %vm198_vm0, %v3357_v0  ;;  %s3361_s24 = smov 16   ;;  %3328 = vmatpush.msk.msra.mxu2 %vm1537_vm2, %v3117_v55  ;;  %3118 = vmatpush.msk.msra.mxu0 %vm1537_vm2, %v3117_v55  ;;  %v3115_v59 = vld [vmem:[%s4812_s1 + $0x18] sm:$0xff]  ;;  %v1403_v63 = vld [vmem:[%s4812_s1 + $0x10] sm:$0xf] }
   0xe   : > { %199 = vst.msk [vmem:[#allocation2] sm:$0xff] %vm198_vm0, %v3357_v0  ;;  %s3326_s17 = sshll.u32 %s4845_s16, 8  ;;  %3331 = vmatpush.msk.msra.mxu3 %vm1537_vm2, %v1403_v63  ;;  %3151 = vmatpush.msk.msra.mxu1 %vm1537_vm2, %v1403_v63  ;;  %vm1205_vm3 = vcmask 64512   ;;  %vm1246_vm4 = vcmask 97280   ;;  %vm1287_vm5 = vcmask 130048   ;;  %vm1328_vm6 = vcmask 162816  }
   0xf   : > { %200 = vst.msk [vmem:[#allocation2 + $0x8] sm:$0xff] %vm198_vm0, %v3357_v0  ;;  %s3411_s20 = scalar_lea.vmem %s4811_s0, %s3326_s17  ;;  %3329 = vmatpush.msra.mxu2 %v3116_v57  ;;  %1555 = vmatpush.msra.mxu0 %v3116_v57  ;;  %s4653_s14 = scalar_lea.vmem %s4815_s4, %s3326_s17 }
  0x10   : > { %203 = vst.msk [vmem:[#allocation2 + $0x18] sm:$0xff] %vm198_vm0, %v3357_v0  ;;  %v274_v1 = vld [vmem:[%s3411_s20 + $0x70] sm:$0xff]  ;;  %v272_v4 = vld [vmem:[%s3411_s20 + $0x60] sm:$0xff]  ;;  %v275_v5 = vld [vmem:[%s3411_s20 + $0x78] sm:$0xff] }
  0x11   : > { %204 = vst.msk [vmem:[#allocation2 + $0x20] sm:$0xff] %vm198_vm0, %v3357_v0  ;;  %v273_v10 = vld [vmem:[%s3411_s20 + $0x68] sm:$0xff]  ;;  %v276_v15 = vld [vmem:[%s3411_s20 + $0x80] sm:$0xff]  ;;  %v278_v33 = vld [vmem:[%s3411_s20 + $0x90] sm:$0xff]  ;;  %3330 = vmatpush.msra.mxu2 %v3115_v59  ;;  %1556 = vmatpush.msra.mxu0 %v3115_v59 }
  0x12   : > { %307 = vst.msk [vmem:[#allocation2 + $0xda] sm:$0xff] %vm198_vm0, %v274_v1  ;;  %v277_v19 = vld [vmem:[%s3411_s20 + $0x88] sm:$0xff]  ;;  %v260_v25 = vld [vmem:[%s3411_s20] sm:$0xff]  ;;  %v279_v37 = vld [vmem:[%s3411_s20 + $0x98] sm:$0xff] }
  0x13   : > { %206 = vst.msk [vmem:[#allocation2 + $0x30] sm:$0xff] %vm198_vm0, %v3357_v0  ;;  %v261_v29 = vld [vmem:[%s3411_s20 + $0x8] sm:$0xff]  ;;  %v262_v44 = vld [vmem:[%s3411_s20 + $0x10] sm:$0xff]  ;;  %v280_v53 = vld [vmem:[%s3411_s20 + $0xa0] sm:$0xff] }
  0x14   : > { %207 = vst.msk [vmem:[#allocation2 + $0x38] sm:$0xff] %vm198_vm0, %v3357_v0  ;;  %v263_v54 = vld [vmem:[%s3411_s20 + $0x18] sm:$0xff] }
  0x15   : > { %209 = vst.msk [vmem:[#allocation2 + $0x48] sm:$0xff] %vm198_vm0, %v3357_v0 }
  0x16   : > { %210 = vst.msk [vmem:[#allocation2 + $0x50] sm:$0xff] %vm198_vm0, %v3357_v0 }
  0x17   : > { %212 = vst.msk [vmem:[#allocation2 + $0x60] sm:$0xff] %vm198_vm0, %v3357_v0  ;;  %v327_v63 = vld [vmem:[#allocation2 + $0x18] sm:$0xff] }
  0x18   : > { %213 = vst.msk [vmem:[#allocation2 + $0x68] sm:$0xff] %vm198_vm0, %v3357_v0  ;;  %v367_v17 = vld [vmem:[#allocation2 + $0x19] sm:$0xff] }
  0x19   : > { %v383_v2 = vld [vmem:[#allocation2 + $0xd9] sm:$0xff]  ;;  %215 = vst.msk [vmem:[#allocation2 + $0x78] sm:$0xff] %vm198_vm0, %v3357_v0 }
  0x1a   : > { %601 = vrot.lane.b32.xlu0 %v383_v2, %s3358_s21  ;;  %216 = vst.msk [vmem:[#allocation2 + $0x80] sm:$0xff] %vm198_vm0, %v3357_v0  ;;  %v423_v3 = vld [vmem:[#allocation2 + $0xda] sm:$0xff]  ;;  %v1402_v2 = vld [vmem:[%s4812_s1 + $0x8] sm:$0xff] }
  0x1b   : > { %218 = vst.msk [vmem:[#allocation2 + $0x90] sm:$0xff] %vm198_vm0, %v3357_v0  ;;  %v407_v21 = vld [vmem:[#allocation2 + $0x1a] sm:$0xff]  ;;  %3332 = vmatpush.msra.mxu3 %v1402_v2  ;;  %1767 = vmatpush.msra.mxu1 %v1402_v2 }
  0x1c   : > { %219 = vst.msk [vmem:[#allocation2 + $0x98] sm:$0xff] %vm198_vm0, %v3357_v0  ;;  %v447_v24 = vld [vmem:[#allocation2 + $0x1b] sm:$0xff] }
  0x1d   : > { %221 = vst.msk [vmem:[#allocation2 + $0xa8] sm:$0xff] %vm198_vm0, %v3357_v0  ;;  %v487_v27 = vld [vmem:[#allocation2 + $0x1c] sm:$0xff] }
  0x1e   : > { %222 = vst.msk [vmem:[#allocation2 + $0xb0] sm:$0xff] %vm198_vm0, %v3357_v0 }
  0x1f   : > { %224 = vst.msk [vmem:[#allocation2 + $0xc0] sm:$0xff] %vm198_vm0, %v3357_v0 }
  0x20   : > { %225 = vst.msk [vmem:[#allocation2 + $0xc8] sm:$0xff] %vm198_vm0, %v3357_v0 }
  0x21   : > { %230 = vst.msk [vmem:[#allocation2 + $0xf0] sm:$0xff] %vm198_vm0, %v3357_v0 }
  0x22   : > { %231 = vst.msk [vmem:[#allocation2 + $0xf8] sm:$0xff] %vm198_vm0, %v3357_v0  ;;  %761 = vrot.lane.b32.xlu0 %v423_v3, %s3359_s22  ;;  %v1401_v3 = vld [vmem:[%s4812_s1] sm:$0xff] }
  0x23   : > { %233 = vst.msk [vmem:[#allocation2 + $0x108] sm:$0xff] %vm198_vm0, %v3357_v0  ;;  %3333 = vmatpush.msra.mxu3 %v1401_v3  ;;  %1768 = vmatpush.msra.mxu1 %v1401_v3 }
  0x24   : > { %234 = vst.msk [vmem:[#allocation2 + $0x110] sm:$0xff] %vm198_vm0, %v3357_v0 }
  0x25   : > { %236 = vst.msk [vmem:[#allocation2 + $0x120] sm:$0xff] %vm198_vm0, %v3357_v0 }
  0x26   : > { %237 = vst.msk [vmem:[#allocation2 + $0x128] sm:$0xff] %vm198_vm0, %v3357_v0 }
  0x27   : > { %239 = vst.msk [vmem:[#allocation2 + $0x138] sm:$0xff] %vm198_vm0, %v3357_v0 }
  0x28   : > { %240 = vst.msk [vmem:[#allocation2 + $0x140] sm:$0xff] %vm198_vm0, %v3357_v0 }
  0x29   : > { %242 = vst.msk [vmem:[#allocation2 + $0x150] sm:$0xff] %vm198_vm0, %v3357_v0 }
  0x2a   : > { %243 = vst.msk [vmem:[#allocation2 + $0x158] sm:$0xff] %vm198_vm0, %v3357_v0 }
  0x2b   : > { %245 = vst.msk [vmem:[#allocation2 + $0x168] sm:$0xff] %vm198_vm0, %v3357_v0 }
  0x2c   : > { %246 = vst.msk [vmem:[#allocation2 + $0x170] sm:$0xff] %vm198_vm0, %v3357_v0 }
  0x2d   : > { %248 = vst.msk [vmem:[#allocation2 + $0x180] sm:$0xff] %vm198_vm0, %v3357_v0 }
  0x2e   : > { %249 = vst.msk [vmem:[#allocation2 + $0x188] sm:$0xff] %vm198_vm0, %v3357_v0 }
  0x2f   : > { %251 = vst.msk [vmem:[#allocation2 + $0x198] sm:$0xff] %vm198_vm0, %v3357_v0 }
  0x30   : > { %252 = vst.msk [vmem:[#allocation2 + $0x1a0] sm:$0xff] %vm198_vm0, %v3357_v0 }
  0x31   : > { %254 = vst.msk [vmem:[#allocation2 + $0x1b0] sm:$0xff] %vm198_vm0, %v3357_v0 }
  0x32   : > { %255 = vst.msk [vmem:[#allocation2 + $0x1b8] sm:$0xff] %vm198_vm0, %v3357_v0 }
  0x33   : > { %257 = vst.msk [vmem:[#allocation2 + $0x1c8] sm:$0xff] %vm198_vm0, %v3357_v0 }
  0x34   : > { %258 = vst.msk [vmem:[#allocation2 + $0x1d0] sm:$0xff] %vm198_vm0, %v3357_v0 }
  0x35   : > { %305 = vst.msk [vmem:[#allocation2 + $0xc2] sm:$0xff] %vm198_vm0, %v272_v4 }
  0x36   : > { %229 = vst.msk [vmem:[#allocation2 + $0xe8] sm:$0xf] %vm201_vm1, %v3357_v0 }
  0x37   : > { %308 = vst.msk [vmem:[#allocation2 + $0xe2] sm:$0xff] %vm198_vm0, %v275_v5 }
  0x38   : > { %202 = vst.msk [vmem:[#allocation2 + $0x10] sm:$0xf] %vm201_vm1, %v3357_v0 }
  0x39   : > { %205 = vst.msk [vmem:[#allocation2 + $0x28] sm:$0xf] %vm201_vm1, %v3357_v0 }
  0x3a   : > { %208 = vst.msk [vmem:[#allocation2 + $0x40] sm:$0xf] %vm201_vm1, %v3357_v0 }
  0x3b   : > { %211 = vst.msk [vmem:[#allocation2 + $0x58] sm:$0xf] %vm201_vm1, %v3357_v0 }
  0x3c   : > { %v381_v6 = vld [vmem:[#allocation2 + $0xc1] sm:$0xff]  ;;  %214 = vst.msk [vmem:[#allocation2 + $0x70] sm:$0xf] %vm201_vm1, %v3357_v0 }
  0x3d   : > { %v421_v7 = vld [vmem:[#allocation2 + $0xc2] sm:$0xff]  ;;  %597 = vrot.lane.b32.xlu1 %v381_v6, %s3358_s21  ;;  %217 = vst.msk [vmem:[#allocation2 + $0x88] sm:$0xf] %vm201_vm1, %v3357_v0 }
  0x3e   : > { %757 = vrot.lane.b32.xlu2 %v421_v7, %s3359_s22  ;;  %220 = vst.msk [vmem:[#allocation2 + $0xa0] sm:$0xf] %vm201_vm1, %v3357_v0  ;;  %v463_v8 = vld [vmem:[#allocation2 + $0xdb] sm:$0xff]  ;;  %v464_v20 = vld [vmem:[#allocation2 + $0xe3] sm:$0xff] }
  0x3f   : > { %223 = vst.msk [vmem:[#allocation2 + $0xb8] sm:$0xf] %vm201_vm1, %v3357_v0  ;;  %v503_v9 = vld [vmem:[#allocation2 + $0xdc] sm:$0xff]  ;;  %v504_v23 = vld [vmem:[#allocation2 + $0xe4] sm:$0xff] }
  0x40   : > { %226 = vst.msk [vmem:[#allocation2 + $0xd0] sm:$0xf] %vm201_vm1, %v3357_v0  ;;  %v384_v11 = vld [vmem:[#allocation2 + $0xe1] sm:$0xff] }
  0x41   : > { %232 = vst.msk [vmem:[#allocation2 + $0x100] sm:$0xf] %vm201_vm1, %v3357_v0  ;;  %v424_v16 = vld [vmem:[#allocation2 + $0xe2] sm:$0xff] }
  0x42   : > { %235 = vst.msk [vmem:[#allocation2 + $0x118] sm:$0xf] %vm201_vm1, %v3357_v0  ;;  %v368_v32 = vld [vmem:[#allocation2 + $0x21] sm:$0xff] }
  0x43   : > { %238 = vst.msk [vmem:[#allocation2 + $0x130] sm:$0xf] %vm201_vm1, %v3357_v0  ;;  %v448_v34 = vld [vmem:[#allocation2 + $0x23] sm:$0xff] }
  0x44   : > { %241 = vst.msk [vmem:[#allocation2 + $0x148] sm:$0xf] %vm201_vm1, %v3357_v0  ;;  %v408_v35 = vld [vmem:[#allocation2 + $0x22] sm:$0xff] }
  0x45   : > { %921 = vrot.lane.b32.xlu1 %v463_v8, %s3360_s23  ;;  %244 = vst.msk [vmem:[#allocation2 + $0x160] sm:$0xf] %vm201_vm1, %v3357_v0  ;;  %v488_v39 = vld [vmem:[#allocation2 + $0x24] sm:$0xff]  ;;  %v343_v8 = vld [vmem:[#allocation2 + $0xd8] sm:$0xff] }
  0x46   : > { %1081 = vrot.lane.b32.xlu2 %v503_v9, %s3361_s24  ;;  %247 = vst.msk [vmem:[#allocation2 + $0x178] sm:$0xf] %vm201_vm1, %v3357_v0 }
  0x47   : > { %250 = vst.msk [vmem:[#allocation2 + $0x190] sm:$0xf] %vm201_vm1, %v3357_v0 }
  0x48   : > { %253 = vst.msk [vmem:[#allocation2 + $0x1a8] sm:$0xf] %vm201_vm1, %v3357_v0 }
  0x49   : > { %256 = vst.msk [vmem:[#allocation2 + $0x1c0] sm:$0xf] %vm201_vm1, %v3357_v0 }
  0x4a   : > { %259 = vst.msk [vmem:[#allocation2 + $0x1d8] sm:$0xf] %vm201_vm1, %v3357_v0  ;;  %v281_v0 = vld [vmem:[%s3411_s20 + $0xa8] sm:$0xff] }
  0x4b   : > { %306 = vst.msk [vmem:[#allocation2 + $0xca] sm:$0xff] %vm198_vm0, %v273_v10 }
  0x4c   : > { %309 = vst.msk [vmem:[#allocation2 + $0xf2] sm:$0xff] %vm198_vm0, %v276_v15 }
  0x4d   : > { %310 = vst.msk [vmem:[#allocation2 + $0xfa] sm:$0xff] %vm198_vm0, %v277_v19 }
  0x4e   : > { %603 = vrot.lane.b32.xlu2 %v384_v11, %s3358_s21  ;;  %293 = vst.msk [vmem:[#allocation2 + $0x32] sm:$0xff] %vm198_vm0, %v260_v25 }
  0x4f   : > { %294 = vst.msk [vmem:[#allocation2 + $0x3a] sm:$0xff] %vm198_vm0, %v261_v29 }
  0x50   : > { %311 = vst.msk [vmem:[#allocation2 + $0x10a] sm:$0xff] %vm198_vm0, %v278_v33 }
  0x51   : > { %312 = vst.msk [vmem:[#allocation2 + $0x112] sm:$0xff] %vm198_vm0, %v279_v37  ;;  %v265_v37 = vld [vmem:[%s3411_s20 + $0x28] sm:$0xff] }
  0x52   : > { %v461_v12 = vld [vmem:[#allocation2 + $0xc3] sm:$0xff]  ;;  %v462_v22 = vld [vmem:[#allocation2 + $0xcb] sm:$0xff]  ;;  %295 = vst.msk [vmem:[#allocation2 + $0x4a] sm:$0xff] %vm198_vm0, %v262_v44 }
  0x53   : > { %v501_v13 = vld [vmem:[#allocation2 + $0xc4] sm:$0xff]  ;;  %917 = vrot.lane.b32.xlu0 %v461_v12, %s3360_s23  ;;  %v385_v26 = vld [vmem:[#allocation2 + $0xf1] sm:$0xff]  ;;  %313 = vst.msk [vmem:[#allocation2 + $0x122] sm:$0xff] %vm198_vm0, %v280_v53 }
  0x54   : > { %v382_v14 = vld [vmem:[#allocation2 + $0xc9] sm:$0xff]  ;;  %1077 = vrot.lane.b32.xlu1 %v501_v13, %s3361_s24  ;;  %v465_v30 = vld [vmem:[#allocation2 + $0xf3] sm:$0xff]  ;;  %v466_v42 = vld [vmem:[#allocation2 + $0xfb] sm:$0xff]  ;;  %296 = vst.msk [vmem:[#allocation2 + $0x52] sm:$0xff] %vm198_vm0, %v263_v54 }
  0x55   : > { %v422_v18 = vld [vmem:[#allocation2 + $0xca] sm:$0xff]  ;;  %v425_v31 = vld [vmem:[#allocation2 + $0xf2] sm:$0xff]  ;;  %v426_v38 = vld [vmem:[#allocation2 + $0xfa] sm:$0xff]  ;;  %314 = vst.msk [vmem:[#allocation2 + $0x12a] sm:$0xff] %vm198_vm0, %v281_v0 }
  0x56   : > { %599 = vrot.lane.b32.xlu2 %v382_v14, %s3358_s21  ;;  %v502_v28 = vld [vmem:[#allocation2 + $0xcc] sm:$0xff]  ;;  %v505_v36 = vld [vmem:[#allocation2 + $0xf4] sm:$0xff]  ;;  %v506_v48 = vld [vmem:[#allocation2 + $0xfc] sm:$0xff]  ;;  %298 = vst.msk [vmem:[#allocation2 + $0x6a] sm:$0xff] %vm198_vm0, %v265_v37 }
  0x57   : > { %v386_v40 = vld [vmem:[#allocation2 + $0xf9] sm:$0xff]  ;;  %v369_v43 = vld [vmem:[#allocation2 + $0x31] sm:$0xff]  ;;  %v387_v52 = vld [vmem:[#allocation2 + $0x109] sm:$0xff] }
  0x58   : > { %v409_v41 = vld [vmem:[#allocation2 + $0x32] sm:$0xff]  ;;  %v427_v51 = vld [vmem:[#allocation2 + $0x10a] sm:$0xff]  ;;  %v410_v60 = vld [vmem:[#allocation2 + $0x3a] sm:$0xff] }
  0x59   : > { %v489_v45 = vld [vmem:[#allocation2 + $0x34] sm:$0xff]  ;;  %v507_v56 = vld [vmem:[#allocation2 + $0x10c] sm:$0xff]  ;;  %v490_v6 = vld [vmem:[#allocation2 + $0x3c] sm:$0xff] }
  0x5a   : > { %v449_v47 = vld [vmem:[#allocation2 + $0x33] sm:$0xff]  ;;  %v467_v61 = vld [vmem:[#allocation2 + $0x10b] sm:$0xff]  ;;  %v450_v7 = vld [vmem:[#allocation2 + $0x3b] sm:$0xff] }
  0x5b   : > { %763 = vrot.lane.b32.xlu0 %v424_v16, %s3359_s22  ;;  %v370_v49 = vld [vmem:[#allocation2 + $0x39] sm:$0xff]  ;;  %v388_v1 = vld [vmem:[#allocation2 + $0x111] sm:$0xff]  ;;  %v371_v15 = vld [vmem:[#allocation2 + $0x49] sm:$0xff] }
  0x5c   : > { %569 = vrot.lane.b32.xlu1 %v367_v17, %s3358_s21  ;;  %v468_v10 = vld [vmem:[#allocation2 + $0x113] sm:$0xff]  ;;  %v451_v19 = vld [vmem:[#allocation2 + $0x4b] sm:$0xff] }
  0x5d   : > { %v428_v16 = vld [vmem:[#allocation2 + $0x112] sm:$0xff]  ;;  %v342_v55 = vld [vmem:[#allocation2 + $0xc8] sm:$0xff] }
  0x5e   : > { %759 = vrot.lane.b32.xlu2 %v422_v18, %s3359_s22  ;;  %v492_v44 = vld [vmem:[#allocation2 + $0x54] sm:$0xff]  ;;  %v430_v0 = vld [vmem:[#allocation2 + $0x12a] sm:$0xff] }
  0x5f   : > { %v283_v54 = vld [vmem:[%s3411_s20 + $0xb8] sm:$0xff] }
  0x60   : > { %316 = vst.msk [vmem:[#allocation2 + $0x142] sm:$0xff] %vm198_vm0, %v283_v54  ;;  %v346_v54 = vld [vmem:[#allocation2 + $0xf8] sm:$0xff] }
  0x63   : > { %923 = vrot.lane.b32.xlu0 %v464_v20, %s3360_s23  ;;  %v341_v20 = vld [vmem:[#allocation2 + $0xc0] sm:$0xff] }
  0x64   : > { %729 = vrot.lane.b32.xlu1 %v407_v21, %s3359_s22 }
  0x66   : > { %919 = vrot.lane.b32.xlu2 %v462_v22, %s3360_s23  ;;  %v508_v22 = vld [vmem:[#allocation2 + $0x114] sm:$0xff] }
  0x6b   : > { %1083 = vrot.lane.b32.xlu0 %v504_v23, %s3361_s24  ;;  %v411_v23 = vld [vmem:[#allocation2 + $0x4a] sm:$0xff] }
  0x6c   : > { %889 = vrot.lane.b32.xlu1 %v447_v24, %s3360_s23 }
  0x6e   : > { %605 = vrot.lane.b32.xlu2 %v385_v26, %s3358_s21  ;;  %v429_v26 = vld [vmem:[#allocation2 + $0x122] sm:$0xff] }
  0x73   : > { %1049 = vrot.lane.b32.xlu0 %v487_v27, %s3361_s24  ;;  %v264_v27 = vld [vmem:[%s3411_s20 + $0x20] sm:$0xff] }
  0x74   : > { %1079 = vrot.lane.b32.xlu1 %v502_v28, %s3361_s24  ;;  %297 = vst.msk [vmem:[#allocation2 + $0x62] sm:$0xff] %vm198_vm0, %v264_v27 }
  0x76   : > { %925 = vrot.lane.b32.xlu2 %v465_v30, %s3360_s23 }
  0x7b   : > { %765 = vrot.lane.b32.xlu0 %v425_v31, %s3359_s22  ;;  %v373_v53 = vld [vmem:[#allocation2 + $0x61] sm:$0xff]  ;;  %v374_v37 = vld [vmem:[#allocation2 + $0x69] sm:$0xff] }
  0x7c   : > { %571 = vrot.lane.b32.xlu1 %v368_v32, %s3358_s21  ;;  %v453_v27 = vld [vmem:[#allocation2 + $0x63] sm:$0xff] }
  0x7e   : > { %891 = vrot.lane.b32.xlu2 %v448_v34, %s3360_s23  ;;  %v389_v34 = vld [vmem:[#allocation2 + $0x121] sm:$0xff] }
  0x83   : > { %731 = vrot.lane.b32.xlu0 %v408_v35, %s3359_s22  ;;  %v491_v35 = vld [vmem:[#allocation2 + $0x4c] sm:$0xff] }
  0x84   : > { %1085 = vrot.lane.b32.xlu1 %v505_v36, %s3361_s24  ;;  %v412_v36 = vld [vmem:[#allocation2 + $0x52] sm:$0xff] }
  0x86   : > { %767 = vrot.lane.b32.xlu2 %v426_v38, %s3359_s22 }
  0x8b   : > { %1051 = vrot.lane.b32.xlu0 %v488_v39, %s3361_s24 }
  0x8c   : > { %607 = vrot.lane.b32.xlu1 %v386_v40, %s3358_s21  ;;  %v602_v62 = vpop.permute.xlu0 %601 }
  0x8d   : > { %v1183_v11 = vsel %vm198_vm0, %v343_v8, %v602_v62 }
  0x8e   : > { %733 = vrot.lane.b32.xlu2 %v409_v41, %s3359_s22 }
  0x93   : > { %573 = vrot.lane.b32.xlu0 %v369_v43, %s3358_s21  ;;  %v372_v43 = vld [vmem:[#allocation2 + $0x51] sm:$0xff] }
  0x94   : > { %927 = vrot.lane.b32.xlu1 %v466_v42, %s3360_s23  ;;  %v762_v9 = vpop.permute.xlu0 %761  ;;  %v469_v42 = vld [vmem:[#allocation2 + $0x123] sm:$0xff] }
  0x95   : > { %v1224_v12 = vsel %vm1205_vm3, %v1183_v11, %v762_v9 }
  0x96   : > { %1053 = vrot.lane.b32.xlu2 %v489_v45, %s3361_s24  ;;  %v282_v45 = vld [vmem:[%s3411_s20 + $0xb0] sm:$0xff] }
  0x97   : > { %315 = vst.msk [vmem:[#allocation2 + $0x13a] sm:$0xff] %vm198_vm0, %v282_v45 }
  0x98   : > { %v3581_v46 = vpop.permute.xlu2 %757 }
  0x9b   : > { %1087 = vrot.lane.b32.xlu0 %v506_v48, %s3361_s24  ;;  %v344_v48 = vld [vmem:[#allocation2 + $0xe0] sm:$0xff] }
  0x9c   : > { %893 = vrot.lane.b32.xlu1 %v449_v47, %s3360_s23 }
  0x9e   : > { %575 = vrot.lane.b32.xlu2 %v370_v49, %s3358_s21 }
  0xa0   : > { %v1082_v50 = vpop.permute.xlu2 %1081 }
  0xa3   : > { %609 = vrot.lane.b32.xlu0 %v387_v52, %s3358_s21 }
  0xa4   : > { %769 = vrot.lane.b32.xlu1 %v427_v51, %s3359_s22  ;;  %v509_v51 = vld [vmem:[#allocation2 + $0x124] sm:$0xff] }
  0xa6   : > { %1089 = vrot.lane.b32.xlu2 %v507_v56, %s3361_s24 }
  0xa8   : > { %v3601_v58 = vpop.permute.xlu2 %603 }
  0xa9   : > { %v1184_v52 = vsel %vm198_vm0, %v344_v48, %v3601_v58  ;;  %v511_v48 = vld [vmem:[#allocation2 + $0x13c] sm:$0xff] }
  0xab   : > { %929 = vrot.lane.b32.xlu0 %v467_v61, %s3360_s23 }
  0xac   : > { %735 = vrot.lane.b32.xlu1 %v410_v60, %s3359_s22 }
  0xae   : > { %611 = vrot.lane.b32.xlu2 %v388_v1, %s3358_s21  ;;  %v390_v1 = vld [vmem:[#allocation2 + $0x129] sm:$0xff] }
  0xaf   : > { %v598_v4 = vpop.permute.xlu1 %597 }
  0xb0   : > { %v3622_v5 = vpop.permute.xlu2 %599  ;;  %v1181_v25 = vsel %vm198_vm0, %v341_v20, %v598_v4  ;;  %v510_v4 = vld [vmem:[#allocation2 + $0x12c] sm:$0xff] }
  0xb1   : > { %v1222_v29 = vsel %vm1205_vm3, %v1181_v25, %v3581_v46  ;;  %v1182_v58 = vsel %vm198_vm0, %v342_v55, %v3622_v5 }
  0xb3   : > { %895 = vrot.lane.b32.xlu0 %v450_v7, %s3360_s23 }
  0xb4   : > { %1055 = vrot.lane.b32.xlu1 %v490_v6, %s3361_s24 }
  0xb6   : > { %931 = vrot.lane.b32.xlu2 %v468_v10, %s3360_s23 }
  0xb7   : > { %v922_v13 = vpop.permute.xlu1 %921 }
  0xb8   : > { %v3629_v14 = vpop.permute.xlu2 %759  ;;  %v1265_v17 = vsel %vm1246_vm4, %v1224_v12, %v922_v13 }
  0xb9   : > { %v1306_v18 = vsel %vm1287_vm5, %v1265_v17, %v1082_v50  ;;  %v452_v50 = vld [vmem:[#allocation2 + $0x53] sm:$0xff]  ;;  %v1223_v2 = vsel %vm1205_vm3, %v1182_v58, %v3629_v14  ;;  %v413_v14 = vld [vmem:[#allocation2 + $0x62] sm:$0xff] }
  0xba   : > { %1347 = vst.msk [vmem:[#allocation3 + $0x90] sm:$0xff] %vm1328_vm6, %v1306_v18  ;;  %v266_v17 = vld [vmem:[%s3411_s20 + $0x30] sm:$0xff] }
  0xbb   : > { %771 = vrot.lane.b32.xlu0 %v428_v16, %s3359_s22  ;;  %v391_v16 = vld [vmem:[#allocation2 + $0x139] sm:$0xff]  ;;  %v345_v18 = vld [vmem:[#allocation2 + $0xf0] sm:$0xff]  ;;  %299 = vst.msk [vmem:[#allocation2 + $0x7a] sm:$0xff] %vm198_vm0, %v266_v17 }
  0xbc   : > { %577 = vrot.lane.b32.xlu1 %v371_v15, %s3358_s21  ;;  %v470_v15 = vld [vmem:[#allocation2 + $0x12b] sm:$0xff] }
  0xbe   : > { %897 = vrot.lane.b32.xlu2 %v451_v19, %s3360_s23 }
  0xc0   : > { %v3637_v21 = vpop.permute.xlu2 %919 }
  0xc1   : > { %v3639_v24 = vld [vmem:[#allocation3 + $0x90] sm:$0xff]  ;;  %v1264_v5 = vsel %vm1246_vm4, %v1223_v2, %v3637_v21 }
  0xc2   : > { %3135 = vmatmul.msk.f32.vlgmr.msra.gmra.mxu2 %vm1328_vm6, %v3639_v24 }
  0xc3   : > { %737 = vrot.lane.b32.xlu0 %v411_v23, %s3359_s22 }
  0xc4   : > { %1091 = vrot.lane.b32.xlu1 %v508_v22, %s3361_s24 }
  0xc5   : > { %v918_v28 = vpop.permute.xlu0 %917 }
  0xc6   : > { %v1078_v30 = vpop.permute.xlu1 %1077  ;;  %773 = vrot.lane.b32.xlu2 %v429_v26, %s3359_s22  ;;  %v1263_v31 = vsel %vm1246_vm4, %v1222_v29, %v918_v28  ;;  %v493_v26 = vld [vmem:[#allocation2 + $0x64] sm:$0xff]  ;;  %v471_v29 = vld [vmem:[#allocation2 + $0x13b] sm:$0xff] }
  0xc7   : > { %v1304_v32 = vsel %vm1287_vm5, %v1263_v31, %v1078_v30  ;;  %v267_v30 = vld [vmem:[%s3411_s20 + $0x38] sm:$0xff] }
  0xc8   : > { %v3653_v33 = vpop.permute.xlu2 %605  ;;  %1345 = vst.msk [vmem:[#allocation3 + $0x80] sm:$0xff] %vm1328_vm6, %v1304_v32 }
  0xc9   : > { %v1185_v22 = vsel %vm198_vm0, %v345_v18, %v3653_v33  ;;  %300 = vst.msk [vmem:[#allocation2 + $0x82] sm:$0xff] %vm198_vm0, %v267_v30 }
  0xcb   : > { %1057 = vrot.lane.b32.xlu0 %v491_v35, %s3361_s24 }
  0xcc   : > { %613 = vrot.lane.b32.xlu1 %v389_v34, %s3358_s21  ;;  %v328_v34 = vld [vmem:[#allocation2 + $0x20] sm:$0xff] }
  0xcd   : > { %v764_v38 = vpop.permute.xlu0 %763 }
  0xce   : > { %v570_v39 = vpop.permute.xlu1 %569  ;;  %739 = vrot.lane.b32.xlu2 %v412_v36, %s3359_s22  ;;  %v1225_v56 = vsel %vm1205_vm3, %v1184_v52, %v764_v38  ;;  %v431_v38 = vld [vmem:[#allocation2 + $0x13a] sm:$0xff] }
  0xcf   : > { %v1385_v40 = vld [vmem:[#allocation3 + $0x80] sm:$0xff]  ;;  %v1167_v3 = vsel %vm198_vm0, %v327_v63, %v570_v39 }
  0xd0   : > { %v3661_v41 = vpop.permute.xlu2 %925  ;;  %3168 = vmatmul.msk.f32.vlgmr.msra.gmra.mxu3 %vm1328_vm6, %v1385_v40  ;;  %v415_v63 = vld [vmem:[#allocation2 + $0x7a] sm:$0xff] }
  0xd1   : > { %v455_v18 = vld [vmem:[#allocation2 + $0x7b] sm:$0xff] }
  0xd3   : > { %579 = vrot.lane.b32.xlu0 %v372_v43, %s3358_s21 }
  0xd4   : > { %933 = vrot.lane.b32.xlu1 %v469_v42, %s3360_s23  ;;  %v284_v42 = vld [vmem:[%s3411_s20 + $0xc0] sm:$0xff] }
  0xd5   : > { %v924_v46 = vpop.permute.xlu0 %923  ;;  %317 = vst.msk [vmem:[#allocation2 + $0x152] sm:$0xff] %vm198_vm0, %v284_v42 }
  0xd6   : > { %v730_v47 = vpop.permute.xlu1 %729  ;;  %1059 = vrot.lane.b32.xlu2 %v492_v44, %s3361_s24  ;;  %v1266_v57 = vsel %vm1246_vm4, %v1225_v56, %v924_v46  ;;  %v329_v56 = vld [vmem:[#allocation2 + $0x30] sm:$0xff] }
  0xd7   : > { %v1208_v6 = vsel %vm1205_vm3, %v1167_v3, %v730_v47 }
  0xd8   : > { %v3669_v49 = vpop.permute.xlu2 %891 }
  0xdb   : > { %1093 = vrot.lane.b32.xlu0 %v509_v51, %s3361_s24  ;;  %v285_v51 = vld [vmem:[%s3411_s20 + $0xc8] sm:$0xff] }
  0xdc   : > { %899 = vrot.lane.b32.xlu1 %v452_v50, %s3360_s23  ;;  %v432_v50 = vld [vmem:[#allocation2 + $0x142] sm:$0xff]  ;;  %318 = vst.msk [vmem:[#allocation2 + $0x15a] sm:$0xff] %vm198_vm0, %v285_v51  ;;  %v433_v30 = vld [vmem:[#allocation2 + $0x152] sm:$0xff] }
  0xdd   : > { %v1084_v59 = vpop.permute.xlu0 %1083 }
  0xde   : > { %v890_v60 = vpop.permute.xlu1 %889  ;;  %581 = vrot.lane.b32.xlu2 %v373_v53, %s3358_s21  ;;  %v1307_v61 = vsel %vm1287_vm5, %v1266_v57, %v1084_v59  ;;  %v392_v59 = vld [vmem:[#allocation2 + $0x141] sm:$0xff] }
  0xdf   : > { %1348 = vst.msk [vmem:[#allocation3 + $0x98] sm:$0xff] %vm1328_vm6, %v1307_v61  ;;  %v1249_v7 = vsel %vm1246_vm4, %v1208_v6, %v890_v60  ;;  %v494_v60 = vld [vmem:[#allocation2 + $0x6c] sm:$0xff] }
  0xe0   : > { %v3684_v62 = vpop.permute.xlu2 %767 }
  0xe3   : > { %615 = vrot.lane.b32.xlu0 %v390_v1, %s3358_s21 }
  0xe4   : > { %775 = vrot.lane.b32.xlu1 %v430_v0, %s3359_s22 }
  0xe5   : > { %v1050_v8 = vpop.permute.xlu0 %1049 }
  0xe6   : > { %v1080_v9 = vpop.permute.xlu1 %1079  ;;  %1095 = vrot.lane.b32.xlu2 %v510_v4, %s3361_s24  ;;  %v1290_v10 = vsel %vm1287_vm5, %v1249_v7, %v1050_v8  ;;  %v1422_v12 = vld [vmem:[#allocation3 + $0x98] sm:$0xff]  ;;  %v472_v8 = vld [vmem:[#allocation2 + $0x143] sm:$0xff] }
  0xe7   : > { %v1305_v11 = vsel %vm1287_vm5, %v1264_v5, %v1080_v9  ;;  %1331 = vst.msk [vmem:[#allocation3 + $0x10] sm:$0xff] %vm1328_vm6, %v1290_v10  ;;  %3136 = vmatmul.msk.f32.gmra.mxu2 %vm1328_vm6, %v1422_v12  ;;  %v375_v9 = vld [vmem:[#allocation2 + $0x79] sm:$0xff] }
  0xe8   : > { %v3700_v13 = vpop.permute.xlu2 %733  ;;  %1346 = vst.msk [vmem:[#allocation3 + $0x88] sm:$0xff] %vm1328_vm6, %v1305_v11  ;;  %v495_v10 = vld [vmem:[#allocation2 + $0x7c] sm:$0xff] }
  0xe9   : > { %v268_v11 = vld [vmem:[%s3411_s20 + $0x40] sm:$0xff] }
  0xea   : > { %301 = vst.msk [vmem:[#allocation2 + $0x92] sm:$0xff] %vm198_vm0, %v268_v11 }
  0xeb   : > { %935 = vrot.lane.b32.xlu0 %v470_v15, %s3360_s23  ;;  %v347_v15 = vld [vmem:[#allocation2 + $0x108] sm:$0xff] }
  0xec   : > { %741 = vrot.lane.b32.xlu1 %v413_v14, %s3359_s22 }
  0xed   : > { %v766_v19 = vpop.permute.xlu0 %765 }
  0xee   : > { %v572_v20 = vpop.permute.xlu1 %571  ;;  %617 = vrot.lane.b32.xlu2 %v391_v16, %s3358_s21  ;;  %v1405_v21 = vld [vmem:[#allocation3 + $0x10] sm:$0xff]  ;;  %v1226_v28 = vsel %vm1205_vm3, %v1185_v22, %v766_v19  ;;  %v512_v19 = vld [vmem:[#allocation2 + $0x144] sm:$0xff] }
  0xef   : > { %3119 = vmatmul.msk.f32.vlgmr.msra.gmra.mxu0 %vm1328_vm6, %v1405_v21  ;;  %v1386_v23 = vld [vmem:[#allocation3 + $0x88] sm:$0xff]  ;;  %v1267_v31 = vsel %vm1246_vm4, %v1226_v28, %v3661_v41  ;;  %v1168_v39 = vsel %vm198_vm0, %v328_v34, %v572_v20  ;;  %v286_v34 = vld [vmem:[%s3411_s20 + $0xd0] sm:$0xff] }
  0xf0   : > { %v3711_v25 = vpop.permute.xlu2 %1053  ;;  %3169 = vmatmul.msk.f32.gmra.mxu3 %vm1328_vm6, %v1386_v23  ;;  %v454_v41 = vld [vmem:[#allocation2 + $0x6b] sm:$0xff]  ;;  %v376_v21 = vld [vmem:[#allocation2 + $0x81] sm:$0xff]  ;;  %319 = vst.msk [vmem:[#allocation2 + $0x16a] sm:$0xff] %vm198_vm0, %v286_v34 }
  0xf3   : > { %901 = vrot.lane.b32.xlu0 %v453_v27, %s3360_s23  ;;  %v330_v27 = vld [vmem:[#allocation2 + $0x38] sm:$0xff] }
  0xf4   : > { %1061 = vrot.lane.b32.xlu1 %v493_v26, %s3361_s24 }
  0xf5   : > { %v732_v32 = vpop.permute.xlu0 %731 }
  0xf6   : > { %v1086_v33 = vpop.permute.xlu1 %1085  ;;  %937 = vrot.lane.b32.xlu2 %v471_v29, %s3360_s23  ;;  %v1209_v40 = vsel %vm1205_vm3, %v1168_v39, %v732_v32 }
  0xf7   : > { %v1308_v35 = vsel %vm1287_vm5, %v1267_v31, %v1086_v33  ;;  %v1250_v43 = vsel %vm1246_vm4, %v1209_v40, %v3669_v49  ;;  %v414_v49 = vld [vmem:[#allocation2 + $0x6a] sm:$0xff]  ;;  %v513_v33 = vld [vmem:[#allocation2 + $0x154] sm:$0xff] }
  0xf8   : > { %1349 = vst.msk [vmem:[#allocation3 + $0xa0] sm:$0xff] %vm1328_vm6, %v1308_v35  ;;  %v3724_v36 = vpop.permute.xlu2 %575  ;;  %3170 = vmatmul.msk.f32.gmra.mxu3 %vm1328_vm6, %v3639_v24  ;;  %v393_v31 = vld [vmem:[#allocation2 + $0x151] sm:$0xff]  ;;  %v269_v35 = vld [vmem:[%s3411_s20 + $0x48] sm:$0xff] }
  0xf9   : > { %v1170_v32 = vsel %vm198_vm0, %v330_v27, %v3724_v36  ;;  %302 = vst.msk [vmem:[#allocation2 + $0x9a] sm:$0xff] %vm198_vm0, %v269_v35  ;;  %v435_v11 = vld [vmem:[#allocation2 + $0x16a] sm:$0xff] }
  0xfb   : > { %777 = vrot.lane.b32.xlu0 %v431_v38, %s3359_s22 }
  0xfc   : > { %583 = vrot.lane.b32.xlu1 %v374_v37, %s3358_s21 }
  0xfd   : > { %v1052_v44 = vpop.permute.xlu0 %1051 }
  0xfe   : > { %v608_v45 = vpop.permute.xlu1 %607  ;;  %903 = vrot.lane.b32.xlu2 %v454_v41, %s3360_s23  ;;  %v1291_v24 = vsel %vm1287_vm5, %v1250_v43, %v1052_v44  ;;  %v416_v43 = vld [vmem:[#allocation2 + $0x82] sm:$0xff]  ;;  %v473_v44 = vld [vmem:[#allocation2 + $0x153] sm:$0xff] }
  0xff   : > { %v1423_v46 = vld [vmem:[#allocation3 + $0xa0] sm:$0xff]  ;;  %1332 = vst.msk [vmem:[#allocation3 + $0x18] sm:$0xff] %vm1328_vm6, %v1291_v24  ;;  %v1186_v61 = vsel %vm198_vm0, %v346_v54, %v608_v45  ;;  %v287_v24 = vld [vmem:[%s3411_s20 + $0xd8] sm:$0xff] }
 0x100   : > { %3137 = vmatmul.msk.f32.gmra.mxu2 %vm1328_vm6, %v1423_v46  ;;  %v3740_v47 = vpop.permute.xlu2 %1089  ;;  %3171 = vmatmul.msk.f32.gmra.mxu3 %vm1328_vm6, %v1422_v12  ;;  %v1227_v0 = vsel %vm1205_vm3, %v1186_v61, %v3684_v62  ;;  %v394_v45 = vld [vmem:[#allocation2 + $0x159] sm:$0xff]  ;;  %320 = vst.msk [vmem:[#allocation2 + $0x172] sm:$0xff] %vm198_vm0, %v287_v24 }
 0x103   : > { %743 = vrot.lane.b32.xlu0 %v414_v49, %s3359_s22 }
 0x104   : > { %1097 = vrot.lane.b32.xlu1 %v511_v48, %s3361_s24 }
 0x105   : > { %v574_v53 = vpop.permute.xlu0 %573 }
 0x106   : > { %v928_v52 = vpop.permute.xlu1 %927  ;;  %779 = vrot.lane.b32.xlu2 %v432_v50, %s3359_s22  ;;  %v1406_v55 = vld [vmem:[#allocation3 + $0x18] sm:$0xff]  ;;  %v1169_v58 = vsel %vm198_vm0, %v329_v56, %v574_v53  ;;  %v456_v53 = vld [vmem:[#allocation2 + $0x83] sm:$0xff] }
 0x107   : > { %3120 = vmatmul.msk.f32.gmra.mxu0 %vm1328_vm6, %v1406_v55  ;;  %v1268_v1 = vsel %vm1246_vm4, %v1227_v0, %v928_v52  ;;  %v1210_v2 = vsel %vm1205_vm3, %v1169_v58, %v3700_v13  ;;  %v496_v52 = vld [vmem:[#allocation2 + $0x84] sm:$0xff]  ;;  %v474_v55 = vld [vmem:[#allocation2 + $0x15b] sm:$0xff]  ;;  %v515_v24 = vld [vmem:[#allocation2 + $0x16c] sm:$0xff] }
 0x108   : > { %v3749_v57 = vpop.permute.xlu2 %611  ;;  %3172 = vmatmul.msk.f32.gmra.mxu3 %vm1328_vm6, %v1423_v46  ;;  %v348_v46 = vld [vmem:[#allocation2 + $0x110] sm:$0xff]  ;;  %v434_v0 = vld [vmem:[#allocation2 + $0x15a] sm:$0xff] }
 0x109   : > { %v1188_v49 = vsel %vm198_vm0, %v348_v46, %v3749_v57  ;;  %v475_v35 = vld [vmem:[#allocation2 + $0x16b] sm:$0xff] }
 0x10b   : > { %1063 = vrot.lane.b32.xlu0 %v494_v60, %s3361_s24  ;;  %v331_v60 = vld [vmem:[#allocation2 + $0x48] sm:$0xff] }
 0x10c   : > { %619 = vrot.lane.b32.xlu1 %v392_v59, %s3358_s21 }
 0x10d   : > { %v1088_v4 = vpop.permute.xlu0 %1087 }
 0x10e   : > { %v894_v3 = vpop.permute.xlu1 %893  ;;  %745 = vrot.lane.b32.xlu2 %v415_v63, %s3359_s22  ;;  %v1309_v5 = vsel %vm1287_vm5, %v1268_v1, %v1088_v4  ;;  %v377_v63 = vld [vmem:[#allocation2 + $0x91] sm:$0xff] }
 0x10f   : > { %v1251_v6 = vsel %vm1246_vm4, %v1210_v2, %v894_v3  ;;  %1350 = vst.msk [vmem:[#allocation3 + $0xa8] sm:$0xff] %vm1328_vm6, %v1309_v5  ;;  %v457_v3 = vld [vmem:[#allocation2 + $0x93] sm:$0xff] }
 0x110   : > { %v1292_v7 = vsel %vm1287_vm5, %v1251_v6, %v3711_v25  ;;  %v3767_v62 = vpop.permute.xlu2 %931 }
 0x111   : > { %1333 = vst.msk [vmem:[#allocation3 + $0x20] sm:$0xff] %vm1328_vm6, %v1292_v7 }
 0x113   : > { %585 = vrot.lane.b32.xlu0 %v375_v9, %s3358_s21  ;;  %v514_v9 = vld [vmem:[#allocation2 + $0x15c] sm:$0xff] }
 0x114   : > { %939 = vrot.lane.b32.xlu1 %v472_v8, %s3360_s23 }
 0x115   : > { %v610_v13 = vpop.permute.xlu0 %609 }
 0x116   : > { %v770_v12 = vpop.permute.xlu1 %769  ;;  %1065 = vrot.lane.b32.xlu2 %v495_v10, %s3361_s24  ;;  %v1424_v14 = vld [vmem:[#allocation3 + $0xa8] sm:$0xff]  ;;  %v1187_v20 = vsel %vm198_vm0, %v347_v15, %v610_v13  ;;  %v417_v10 = vld [vmem:[#allocation2 + $0x92] sm:$0xff]  ;;  %v349_v15 = vld [vmem:[#allocation2 + $0x120] sm:$0xff] }
 0x117   : > { %3138 = vmatmul.msk.f32.gmra.mxu2 %vm1328_vm6, %v1424_v14  ;;  %3173 = vmatmul.msk.f32.gmra.mxu3 %vm1328_vm6, %v1424_v14  ;;  %v1228_v23 = vsel %vm1205_vm3, %v1187_v20, %v770_v12  ;;  %v270_v12 = vld [vmem:[%s3411_s20 + $0x50] sm:$0xff] }
 0x118   : > { %v1407_v16 = vld [vmem:[#allocation3 + $0x20] sm:$0xff]  ;;  %v3777_v17 = vpop.permute.xlu2 %897  ;;  %303 = vst.msk [vmem:[#allocation2 + $0xaa] sm:$0xff] %vm198_vm0, %v270_v12  ;;  %v497_v20 = vld [vmem:[#allocation2 + $0x94] sm:$0xff] }
 0x119   : > { %3121 = vmatmul.msk.f32.gmra.mxu0 %vm1328_vm6, %v1407_v16 }
 0x11b   : > { %1099 = vrot.lane.b32.xlu0 %v512_v19, %s3361_s24  ;;  %v395_v19 = vld [vmem:[#allocation2 + $0x169] sm:$0xff] }
 0x11c   : > { %905 = vrot.lane.b32.xlu1 %v455_v18, %s3360_s23 }
 0x11d   : > { %v930_v25 = vpop.permute.xlu0 %929 }
 0x11e   : > { %v736_v22 = vpop.permute.xlu1 %735  ;;  %587 = vrot.lane.b32.xlu2 %v376_v21, %s3358_s21  ;;  %v1269_v26 = vsel %vm1246_vm4, %v1228_v23, %v930_v25  ;;  %v271_v23 = vld [vmem:[%s3411_s20 + $0x58] sm:$0xff] }
 0x11f   : > { %v1310_v28 = vsel %vm1287_vm5, %v1269_v26, %v3740_v47  ;;  %v1211_v37 = vsel %vm1205_vm3, %v1170_v32, %v736_v22  ;;  %v418_v26 = vld [vmem:[#allocation2 + $0x9a] sm:$0xff]  ;;  %304 = vst.msk [vmem:[#allocation2 + $0xb2] sm:$0xff] %vm198_vm0, %v271_v23 }
 0x120   : > { %v3788_v29 = vpop.permute.xlu2 %773  ;;  %1351 = vst.msk [vmem:[#allocation3 + $0xb0] sm:$0xff] %vm1328_vm6, %v1310_v28 }
 0x123   : > { %621 = vrot.lane.b32.xlu0 %v393_v31, %s3358_s21 }
 0x124   : > { %781 = vrot.lane.b32.xlu1 %v433_v30, %s3359_s22 }
 0x125   : > { %v896_v39 = vpop.permute.xlu0 %895 }
 0x126   : > { %v1056_v38 = vpop.permute.xlu1 %1055  ;;  %1101 = vrot.lane.b32.xlu2 %v513_v33, %s3361_s24  ;;  %v1252_v36 = vsel %vm1246_vm4, %v1211_v37, %v896_v39  ;;  %v378_v37 = vld [vmem:[#allocation2 + $0x99] sm:$0xff] }
 0x127   : > { %v1293_v40 = vsel %vm1287_vm5, %v1252_v36, %v1056_v38  ;;  %v1425_v41 = vld [vmem:[#allocation3 + $0xb0] sm:$0xff]  ;;  %v288_v38 = vld [vmem:[%s3411_s20 + $0xe0] sm:$0xff] }
 0x128   : > { %v3803_v42 = vpop.permute.xlu2 %739  ;;  %1334 = vst.msk [vmem:[#allocation3 + $0x28] sm:$0xff] %vm1328_vm6, %v1293_v40  ;;  %3139 = vmatmul.msk.f32.gmra.mxu2 %vm1328_vm6, %v1425_v41  ;;  %3174 = vmatmul.msk.f32.gmra.mxu3 %vm1328_vm6, %v1425_v41  ;;  %v498_v39 = vld [vmem:[#allocation2 + $0x9c] sm:$0xff] }
 0x129   : > { %321 = vst.msk [vmem:[#allocation2 + $0x182] sm:$0xff] %vm198_vm0, %v288_v38 }
 0x12b   : > { %941 = vrot.lane.b32.xlu0 %v473_v44, %s3360_s23 }
 0x12c   : > { %747 = vrot.lane.b32.xlu1 %v416_v43, %s3359_s22 }
 0x12d   : > { %v772_v48 = vpop.permute.xlu0 %771 }
 0x12e   : > { %v578_v47 = vpop.permute.xlu1 %577  ;;  %623 = vrot.lane.b32.xlu2 %v394_v45, %s3358_s21  ;;  %v1229_v54 = vsel %vm1205_vm3, %v1188_v49, %v772_v48  ;;  %v458_v45 = vld [vmem:[#allocation2 + $0x9b] sm:$0xff]  ;;  %v289_v48 = vld [vmem:[%s3411_s20 + $0xe8] sm:$0xff] }
 0x12f   : > { %v3815_v50 = vld [vmem:[#allocation3 + $0x28] sm:$0xff]  ;;  %v1270_v56 = vsel %vm1246_vm4, %v1229_v54, %v3767_v62  ;;  %v1171_v1 = vsel %vm198_vm0, %v331_v60, %v578_v47  ;;  %322 = vst.msk [vmem:[#allocation2 + $0x18a] sm:$0xff] %vm198_vm0, %v289_v48  ;;  %v333_v54 = vld [vmem:[#allocation2 + $0x60] sm:$0xff] }
 0x130   : > { %v3817_v51 = vpop.permute.xlu2 %1059  ;;  %3122 = vmatmul.msk.f32.gmra.mxu0 %vm1328_vm6, %v3815_v50  ;;  %v379_v47 = vld [vmem:[#allocation2 + $0xa9] sm:$0xff] }
 0x133   : > { %907 = vrot.lane.b32.xlu0 %v456_v53, %s3360_s23 }
 0x134   : > { %1067 = vrot.lane.b32.xlu1 %v496_v52, %s3361_s24 }
 0x135   : > { %v738_v59 = vpop.permute.xlu0 %737 }
 0x136   : > { %v1092_v57 = vpop.permute.xlu1 %1091  ;;  %943 = vrot.lane.b32.xlu2 %v474_v55, %s3360_s23  ;;  %v1212_v2 = vsel %vm1205_vm3, %v1171_v1, %v738_v59  ;;  %v396_v59 = vld [vmem:[#allocation2 + $0x171] sm:$0xff]  ;;  %v517_v38 = vld [vmem:[#allocation2 + $0x184] sm:$0xff] }
 0x137   : > { %v1311_v61 = vsel %vm1287_vm5, %v1270_v56, %v1092_v57  ;;  %v1253_v4 = vsel %vm1246_vm4, %v1212_v2, %v3777_v17  ;;  %v332_v17 = vld [vmem:[#allocation2 + $0x50] sm:$0xff] }
 0x138   : > { %1352 = vst.msk [vmem:[#allocation3 + $0xb8] sm:$0xff] %vm1328_vm6, %v1311_v61  ;;  %v3829_v58 = vpop.permute.xlu2 %581  ;;  %v436_v57 = vld [vmem:[#allocation2 + $0x172] sm:$0xff]  ;;  %v398_v48 = vld [vmem:[#allocation2 + $0x189] sm:$0xff] }
 0x139   : > { %v1173_v60 = vsel %vm198_vm0, %v333_v54, %v3829_v58  ;;  %v516_v61 = vld [vmem:[#allocation2 + $0x174] sm:$0xff]  ;;  %v419_v58 = vld [vmem:[#allocation2 + $0xaa] sm:$0xff] }
 0x13b   : > { %783 = vrot.lane.b32.xlu0 %v434_v0, %s3359_s22 }
 0x13c   : > { %589 = vrot.lane.b32.xlu1 %v377_v63, %s3358_s21 }
 0x13d   : > { %v1058_v5 = vpop.permute.xlu0 %1057 }
 0x13e   : > { %v614_v6 = vpop.permute.xlu1 %613  ;;  %909 = vrot.lane.b32.xlu2 %v457_v3, %s3360_s23  ;;  %v1294_v7 = vsel %vm1287_vm5, %v1253_v4, %v1058_v5  ;;  %v476_v5 = vld [vmem:[#allocation2 + $0x173] sm:$0xff] }
 0x13f   : > { %v1426_v62 = vld [vmem:[#allocation3 + $0xb8] sm:$0xff]  ;;  %1335 = vst.msk [vmem:[#allocation3 + $0x30] sm:$0xff] %vm1328_vm6, %v1294_v7  ;;  %v1189_v21 = vsel %vm198_vm0, %v349_v15, %v614_v6  ;;  %v397_v7 = vld [vmem:[#allocation2 + $0x181] sm:$0xff] }
 0x140   : > { %3140 = vmatmul.msk.f32.gmra.mxu2 %vm1328_vm6, %v1426_v62  ;;  %3175 = vmatmul.msk.f32.gmra.mxu3 %vm1328_vm6, %v1426_v62  ;;  %v3842_v8 = vpop.permute.xlu2 %1095  ;;  %v1230_v25 = vsel %vm1205_vm3, %v1189_v21, %v3788_v29  ;;  %v351_v62 = vld [vmem:[#allocation2 + $0x138] sm:$0xff]  ;;  %v334_v21 = vld [vmem:[#allocation2 + $0x68] sm:$0xff] }
 0x143   : > { %749 = vrot.lane.b32.xlu0 %v417_v10, %s3359_s22 }
 0x144   : > { %1103 = vrot.lane.b32.xlu1 %v514_v9, %s3361_s24 }
 0x145   : > { %v580_v14 = vpop.permute.xlu0 %579 }
 0x146   : > { %v934_v13 = vpop.permute.xlu1 %933  ;;  %785 = vrot.lane.b32.xlu2 %v435_v11, %s3359_s22  ;;  %v3849_v16 = vld [vmem:[#allocation3 + $0x30] sm:$0xff]  ;;  %v1172_v22 = vsel %vm198_vm0, %v332_v17, %v580_v14  ;;  %v477_v17 = vld [vmem:[#allocation2 + $0x183] sm:$0xff] }
 0x147   : > { %3123 = vmatmul.msk.f32.gmra.mxu0 %vm1328_vm6, %v3849_v16  ;;  %v1271_v27 = vsel %vm1246_vm4, %v1230_v25, %v934_v13  ;;  %v1213_v28 = vsel %vm1205_vm3, %v1172_v22, %v3803_v42  ;;  %v350_v42 = vld [vmem:[#allocation2 + $0x128] sm:$0xff]  ;;  %v380_v25 = vld [vmem:[#allocation2 + $0xb1] sm:$0xff] }
 0x148   : > { %v3853_v18 = vpop.permute.xlu2 %617  ;;  %v499_v13 = vld [vmem:[#allocation2 + $0xac] sm:$0xff] }
 0x149   : > { %v1191_v10 = vsel %vm198_vm0, %v351_v62, %v3853_v18  ;;  %v459_v14 = vld [vmem:[#allocation2 + $0xab] sm:$0xff]  ;;  %v405_v62 = vld [vmem:[#allocation2 + $0x2] sm:$0xff] }
 0x14b   : > { %1069 = vrot.lane.b32.xlu0 %v497_v20, %s3361_s24 }
 0x14c   : > { %625 = vrot.lane.b32.xlu1 %v395_v19, %s3358_s21 }
 0x14d   : > { %v1094_v31 = vpop.permute.xlu0 %1093 }
 0x14e   : > { %v900_v30 = vpop.permute.xlu1 %899  ;;  %751 = vrot.lane.b32.xlu2 %v418_v26, %s3359_s22  ;;  %v1312_v33 = vsel %vm1287_vm5, %v1271_v27, %v1094_v31  ;;  %v437_v26 = vld [vmem:[#allocation2 + $0x182] sm:$0xff]  ;;  %v460_v31 = vld [vmem:[#allocation2 + $0xb3] sm:$0xff] }
 0x14f   : > { %v1254_v32 = vsel %vm1246_vm4, %v1213_v28, %v900_v30  ;;  %1353 = vst.msk [vmem:[#allocation3 + $0xc0] sm:$0xff] %vm1328_vm6, %v1312_v33  ;;  %v3186_v30 = vld [vmem:[%s4812_s1 + $0x40] sm:$0xf] }
 0x150   : > { %v1295_v29 = vsel %vm1287_vm5, %v1254_v32, %v3817_v51  ;;  %v3872_v34 = vpop.permute.xlu2 %937  ;;  %3187 = vmatpush.msk.msrb.mxu2 %vm1537_vm2, %v3186_v30  ;;  %v3222_v32 = vld [vmem:[%s4812_s1 + $0x58] sm:$0xf] }
 0x151   : > { %1336 = vst.msk [vmem:[#allocation3 + $0x38] sm:$0xff] %vm1328_vm6, %v1295_v29  ;;  %3223 = vmatpush.msk.msrb.mxu3 %vm1537_vm2, %v3222_v32  ;;  %v3185_v30 = vld [vmem:[%s4812_s1 + $0x38] sm:$0xff] }
 0x152   : > { %2016 = vmatpush.msrb.mxu2 %v3185_v30 }
 0x153   : > { %591 = vrot.lane.b32.xlu0 %v378_v37, %s3358_s21 }
 0x154   : > { %945 = vrot.lane.b32.xlu1 %v475_v35, %s3360_s23 }
 0x155   : > { %v616_v40 = vpop.permute.xlu0 %615 }
 0x156   : > { %v776_v36 = vpop.permute.xlu1 %775  ;;  %1071 = vrot.lane.b32.xlu2 %v498_v39, %s3361_s24  ;;  %v1427_v41 = vld [vmem:[#allocation3 + $0xc0] sm:$0xff]  ;;  %v1190_v46 = vsel %vm198_vm0, %v350_v42, %v616_v40  ;;  %v420_v39 = vld [vmem:[#allocation2 + $0xb2] sm:$0xff] }
 0x157   : > { %3141 = vmatmul.msk.f32.gmra.mxu2 %vm1328_vm6, %v1427_v41  ;;  %3176 = vmatmul.msk.f32.gmra.mxu3 %vm1328_vm6, %v1427_v41  ;;  %v1231_v51 = vsel %vm1205_vm3, %v1190_v46, %v776_v36  ;;  %v3258_v40 = vld [vmem:[%s4812_s1 + $0x70] sm:$0xf]  ;;  %v335_v46 = vld [vmem:[#allocation2 + $0x78] sm:$0xff] }
 0x158   : > { %v3882_v43 = vld [vmem:[#allocation3 + $0x38] sm:$0xff]  ;;  %v3884_v44 = vpop.permute.xlu2 %903  ;;  %3259 = vmatpush.msk.msrb.mxu0 %vm1537_vm2, %v3258_v40  ;;  %v3257_v40 = vld [vmem:[%s4812_s1 + $0x68] sm:$0xff] }
 0x159   : > { %3124 = vmatmul.msk.f32.gmra.mxu0 %vm1328_vm6, %v3882_v43 }
 0x15a   : > { %2578 = vmatpush.msrb.mxu0 %v3257_v40 }
 0x15b   : > { %1105 = vrot.lane.b32.xlu0 %v515_v24, %s3361_s24 }
 0x15c   : > { %911 = vrot.lane.b32.xlu1 %v458_v45, %s3360_s23  ;;  %v352_v45 = vld [vmem:[#allocation2 + $0x140] sm:$0xff] }
 0x15d   : > { %v936_v52 = vpop.permute.xlu0 %935 }
 0x15e   : > { %v742_v49 = vpop.permute.xlu1 %741  ;;  %593 = vrot.lane.b32.xlu2 %v379_v47, %s3358_s21  ;;  %v1272_v53 = vsel %vm1246_vm4, %v1231_v51, %v936_v52  ;;  %v500_v47 = vld [vmem:[#allocation2 + $0xb4] sm:$0xff] }
 0x15f   : > { %v1313_v55 = vsel %vm1287_vm5, %v1272_v53, %v3842_v8  ;;  %v1214_v63 = vsel %vm1205_vm3, %v1173_v60, %v742_v49  ;;  %v365_v60 = vld [vmem:[#allocation2 + $0x1] sm:$0xff] }
 0x160   : > { %v3898_v56 = vpop.permute.xlu2 %779  ;;  %1354 = vst.msk [vmem:[#allocation3 + $0xc8] sm:$0xff] %vm1328_vm6, %v1313_v55 }
 0x163   : > { %627 = vrot.lane.b32.xlu0 %v396_v59, %s3358_s21 }
 0x164   : > { %787 = vrot.lane.b32.xlu1 %v436_v57, %s3359_s22 }
 0x165   : > { %v902_v1 = vpop.permute.xlu0 %901 }
 0x166   : > { %v1062_v0 = vpop.permute.xlu1 %1061  ;;  %1107 = vrot.lane.b32.xlu2 %v516_v61, %s3361_s24  ;;  %v1255_v2 = vsel %vm1246_vm4, %v1214_v63, %v902_v1  ;;  %v518_v1 = vld [vmem:[#allocation2 + $0x18c] sm:$0xff] }
 0x167   : > { %v1296_v3 = vsel %vm1287_vm5, %v1255_v2, %v1062_v0  ;;  %v1428_v4 = vld [vmem:[#allocation3 + $0xc8] sm:$0xff] }
 0x168   : > { %v3909_v6 = vpop.permute.xlu2 %745  ;;  %1337 = vst.msk [vmem:[#allocation3 + $0x40] sm:$0xff] %vm1328_vm6, %v1296_v3  ;;  %3142 = vmatmul.msk.f32.gmra.mxu2 %vm1328_vm6, %v1428_v4  ;;  %3177 = vmatmul.msk.f32.gmra.mxu3 %vm1328_vm6, %v1428_v4 }
 0x16b   : > { %947 = vrot.lane.b32.xlu0 %v476_v5, %s3360_s23  ;;  %v353_v5 = vld [vmem:[#allocation2 + $0x150] sm:$0xff] }
 0x16c   : > { %753 = vrot.lane.b32.xlu1 %v419_v58, %s3359_s22 }
 0x16d   : > { %v778_v9 = vpop.permute.xlu0 %777 }
 0x16e   : > { %v584_v8 = vpop.permute.xlu1 %583  ;;  %629 = vrot.lane.b32.xlu2 %v397_v7, %s3358_s21  ;;  %v1232_v15 = vsel %vm1205_vm3, %v1191_v10, %v778_v9 }
 0x16f   : > { %v3919_v11 = vld [vmem:[#allocation3 + $0x40] sm:$0xff]  ;;  %v1273_v19 = vsel %vm1246_vm4, %v1232_v15, %v3872_v34  ;;  %v1174_v27 = vsel %vm198_vm0, %v334_v21, %v584_v8  ;;  %v406_v21 = vld [vmem:[#allocation2 + $0xa] sm:$0xff] }
 0x170   : > { %v3921_v12 = vpop.permute.xlu2 %1065  ;;  %3125 = vmatmul.msk.f32.gmra.mxu0 %vm1328_vm6, %v3919_v11  ;;  %v445_v8 = vld [vmem:[#allocation2 + $0x3] sm:$0xff] }
 0x173   : > { %913 = vrot.lane.b32.xlu0 %v459_v14, %s3360_s23  ;;  %v446_v14 = vld [vmem:[#allocation2 + $0xb] sm:$0xff] }
 0x174   : > { %1073 = vrot.lane.b32.xlu1 %v499_v13, %s3361_s24 }
 0x175   : > { %v744_v20 = vpop.permute.xlu0 %743 }
 0x176   : > { %v1098_v18 = vpop.permute.xlu1 %1097  ;;  %949 = vrot.lane.b32.xlu2 %v477_v17, %s3360_s23  ;;  %v1215_v28 = vsel %vm1205_vm3, %v1174_v27, %v744_v20  ;;  %v366_v20 = vld [vmem:[#allocation2 + $0x9] sm:$0xff] }
 0x177   : > { %v1314_v22 = vsel %vm1287_vm5, %v1273_v19, %v1098_v18  ;;  %v1256_v33 = vsel %vm1246_vm4, %v1215_v28, %v3884_v44  ;;  %v438_v44 = vld [vmem:[#allocation2 + $0x18a] sm:$0xff]  ;;  %v336_v19 = vld [vmem:[#allocation2 + $0x80] sm:$0xff] }
 0x178   : > { %1355 = vst.msk [vmem:[#allocation3 + $0xd0] sm:$0xff] %vm1328_vm6, %v1314_v22  ;;  %v3933_v23 = vpop.permute.xlu2 %587 }
 0x179   : > { %v1176_v22 = vsel %vm198_vm0, %v336_v19, %v3933_v23  ;;  %v3221_v23 = vld [vmem:[%s4812_s1 + $0x50] sm:$0xff] }
 0x17a   : > { %2297 = vmatpush.msrb.mxu3 %v3221_v23  ;;  %v339_v23 = vld [vmem:[#allocation2 + $0xa8] sm:$0xff] }
 0x17b   : > { %789 = vrot.lane.b32.xlu0 %v437_v26, %s3359_s22 }
 0x17c   : > { %595 = vrot.lane.b32.xlu1 %v380_v25, %s3358_s21 }
 0x17d   : > { %v1064_v34 = vpop.permute.xlu0 %1063 }
 0x17e   : > { %v620_v29 = vpop.permute.xlu1 %619  ;;  %915 = vrot.lane.b32.xlu2 %v460_v31, %s3360_s23  ;;  %v1297_v35 = vsel %vm1287_vm5, %v1256_v33, %v1064_v34  ;;  %v486_v33 = vld [vmem:[#allocation2 + $0xc] sm:$0xff]  ;;  %v354_v34 = vld [vmem:[#allocation2 + $0x158] sm:$0xff] }
 0x17f   : > { %v3951_v37 = vld [vmem:[#allocation3 + $0xd0] sm:$0xff]  ;;  %1338 = vst.msk [vmem:[#allocation3 + $0x48] sm:$0xff] %vm1328_vm6, %v1297_v35  ;;  %v1192_v49 = vsel %vm198_vm0, %v352_v45, %v620_v29 }
 0x180   : > { %3143 = vmatmul.msk.f32.gmra.mxu2 %vm1328_vm6, %v3951_v37  ;;  %3178 = vmatmul.msk.f32.gmra.mxu3 %vm1328_vm6, %v3951_v37  ;;  %v1102_v36 = vpop.permute.xlu2 %1101  ;;  %v1233_v53 = vsel %vm1205_vm3, %v1192_v49, %v3898_v56  ;;  %v478_v56 = vld [vmem:[#allocation2 + $0x18b] sm:$0xff] }
 0x183   : > { %755 = vrot.lane.b32.xlu0 %v420_v39, %s3359_s22 }
 0x184   : > { %1109 = vrot.lane.b32.xlu1 %v517_v38, %s3361_s24 }
 0x185   : > { %v586_v42 = vpop.permute.xlu0 %585 }
 0x186   : > { %v940_v41 = vpop.permute.xlu1 %939  ;;  %v3964_v24 = vld [vmem:[#allocation3 + $0x48] sm:$0xff]  ;;  %791 = vrot.lane.b32.xlu2 %v438_v44, %s3359_s22  ;;  %v1175_v51 = vsel %vm198_vm0, %v335_v46, %v586_v42 }
 0x187   : > { %3126 = vmatmul.msk.f32.gmra.mxu0 %vm1328_vm6, %v3964_v24  ;;  %v1274_v54 = vsel %vm1246_vm4, %v1233_v53, %v940_v41  ;;  %v1216_v55 = vsel %vm1205_vm3, %v1175_v51, %v3909_v6  ;;  %v485_v6 = vld [vmem:[#allocation2 + $0x4] sm:$0xff] }
 0x188   : > { %v3971_v52 = vpop.permute.xlu2 %623 }
 0x189   : > { %v1194_v39 = vsel %vm198_vm0, %v354_v34, %v3971_v52 }
 0x18b   : > { %1075 = vrot.lane.b32.xlu0 %v500_v47, %s3361_s24  ;;  %v337_v47 = vld [vmem:[#allocation2 + $0x90] sm:$0xff] }
 0x18c   : > { %631 = vrot.lane.b32.xlu1 %v398_v48, %s3358_s21 }
 0x18d   : > { %v1100_v59 = vpop.permute.xlu0 %1099 }
 0x18e   : > { %v906_v57 = vpop.permute.xlu1 %905  ;;  %v1315_v63 = vsel %vm1287_vm5, %v1274_v54, %v1100_v59  ;;  %565 = vrot.lane.b32.xlu2 %v365_v60, %s3358_s21 }
 0x18f   : > { %v1257_v61 = vsel %vm1246_vm4, %v1216_v55, %v906_v57  ;;  %1356 = vst.msk [vmem:[#allocation3 + $0xd8] sm:$0xff] %vm1328_vm6, %v1315_v63  ;;  %v355_v63 = vld [vmem:[#allocation2 + $0x168] sm:$0xff] }
 0x190   : > { %v1298_v0 = vsel %vm1287_vm5, %v1257_v61, %v3921_v12  ;;  %v944_v2 = vpop.permute.xlu2 %943 }
 0x191   : > { %1339 = vst.msk [vmem:[#allocation3 + $0x50] sm:$0xff] %vm1328_vm6, %v1298_v0 }
 0x193   : > { %951 = vrot.lane.b32.xlu0 %v478_v56, %s3360_s23 }
 0x194   : > { %1111 = vrot.lane.b32.xlu1 %v518_v1, %s3361_s24  ;;  %v338_v1 = vld [vmem:[#allocation2 + $0x98] sm:$0xff] }
 0x195   : > { %v622_v4 = vpop.permute.xlu0 %621 }
 0x196   : > { %v782_v3 = vpop.permute.xlu1 %781  ;;  %v3989_v58 = vld [vmem:[#allocation3 + $0xd8] sm:$0xff]  ;;  %1045 = vrot.lane.b32.xlu2 %v485_v6, %s3361_s24  ;;  %v1193_v9 = vsel %vm198_vm0, %v353_v5, %v622_v4 }
 0x197   : > { %3144 = vmatmul.msk.f32.gmra.mxu2 %vm1328_vm6, %v3989_v58  ;;  %3179 = vmatmul.msk.f32.gmra.mxu3 %vm1328_vm6, %v3989_v58  ;;  %v1234_v12 = vsel %vm1205_vm3, %v1193_v9, %v782_v3 }
 0x198   : > { %v3996_v7 = vld [vmem:[#allocation3 + $0x50] sm:$0xff]  ;;  %v910_v17 = vpop.permute.xlu2 %909 }
 0x199   : > { %3127 = vmatmul.msk.f32.gmra.mxu0 %vm1328_vm6, %v3996_v7 }
 0x19b   : > { %725 = vrot.lane.b32.xlu0 %v405_v62, %s3359_s22 }
 0x19c   : > { %885 = vrot.lane.b32.xlu1 %v445_v8, %s3360_s23 }
 0x19d   : > { %v942_v13 = vpop.permute.xlu0 %941 }
 0x19e   : > { %v748_v10 = vpop.permute.xlu1 %747  ;;  %v1275_v15 = vsel %vm1246_vm4, %v1234_v12, %v942_v13  ;;  %887 = vrot.lane.b32.xlu2 %v446_v14, %s3360_s23  ;;  %v3220_v13 = vld [vmem:[%s4812_s1 + $0x48] sm:$0xff] }
 0x19f   : > { %v1316_v18 = vsel %vm1287_vm5, %v1275_v15, %v1102_v36  ;;  %v1217_v25 = vsel %vm1205_vm3, %v1176_v22, %v748_v10  ;;  %2298 = vmatpush.msrb.mxu3 %v3220_v13  ;;  %v3184_v15 = vld [vmem:[%s4812_s1 + $0x30] sm:$0xff]  ;;  %v3256_v22 = vld [vmem:[%s4812_s1 + $0x60] sm:$0xff] }
 0x1a0   : > { %1357 = vst.msk [vmem:[#allocation3 + $0xe0] sm:$0xff] %vm1328_vm6, %v1316_v18  ;;  %v786_v29 = vpop.permute.xlu2 %785  ;;  %2017 = vmatpush.msrb.mxu2 %v3184_v15  ;;  %2579 = vmatpush.msrb.mxu0 %v3256_v22  ;;  %v2775_v22 = vld [vmem:[%s4813_s2] sm:$0xff] }
 0x1a1   : > { %2889 = vmatpush.msrb.mxu1 %v2775_v22 }
 0x1a3   : > { %567 = vrot.lane.b32.xlu0 %v366_v20, %s3358_s21  ;;  %v356_v20 = vld [vmem:[#allocation2 + $0x170] sm:$0xff] }
 0x1a4   : > { %727 = vrot.lane.b32.xlu1 %v406_v21, %s3359_s22 }
 0x1a5   : > { %v908_v27 = vpop.permute.xlu0 %907 }
 0x1a6   : > { %v1068_v26 = vpop.permute.xlu1 %1067  ;;  %v1258_v28 = vsel %vm1246_vm4, %v1217_v25, %v908_v27 }
 0x1a7   : > { %v1299_v31 = vsel %vm1287_vm5, %v1258_v28, %v1068_v26  ;;  %v4018_v32 = vld [vmem:[#allocation3 + $0xe0] sm:$0xff] }
 0x1a8   : > { %1340 = vst.msk [vmem:[#allocation3 + $0x58] sm:$0xff] %vm1328_vm6, %v1299_v31  ;;  %3145 = vmatmul.msk.f32.gmra.mxu2 %vm1328_vm6, %v4018_v32  ;;  %3180 = vmatmul.msk.f32.gmra.mxu3 %vm1328_vm6, %v4018_v32  ;;  %v752_v42 = vpop.permute.xlu2 %751 }
 0x1ab   : > { %1047 = vrot.lane.b32.xlu0 %v486_v33, %s3361_s24 }
 0x1ad   : > { %v784_v38 = vpop.permute.xlu0 %783 }
 0x1ae   : > { %v590_v35 = vpop.permute.xlu1 %589  ;;  %v1235_v41 = vsel %vm1205_vm3, %v1194_v39, %v784_v38 }
 0x1af   : > { %v4031_v36 = vld [vmem:[#allocation3 + $0x58] sm:$0xff]  ;;  %v1276_v44 = vsel %vm1246_vm4, %v1235_v41, %v944_v2  ;;  %v1177_v49 = vsel %vm198_vm0, %v337_v47, %v590_v35 }
 0x1b0   : > { %3128 = vmatmul.msk.f32.gmra.mxu0 %vm1328_vm6, %v4031_v36  ;;  %v1072_v52 = vpop.permute.xlu2 %1071 }
 0x1b5   : > { %v750_v46 = vpop.permute.xlu0 %749 }
 0x1b6   : > { %v1104_v45 = vpop.permute.xlu1 %1103  ;;  %v1218_v51 = vsel %vm1205_vm3, %v1177_v49, %v750_v46 }
 0x1b7   : > { %v1317_v48 = vsel %vm1287_vm5, %v1276_v44, %v1104_v45  ;;  %v1259_v53 = vsel %vm1246_vm4, %v1218_v51, %v910_v17  ;;  %v4102_v44 = vpop.f32.mrf.mxu3  ;;  %v357_v45 = vld [vmem:[#allocation2 + $0x180] sm:$0xff] }
 0x1b8   : > { %1358 = vst.msk [vmem:[#allocation3 + $0xe8] sm:$0xff] %vm1328_vm6, %v1317_v48  ;;  %v594_v56 = vpop.permute.xlu2 %593 }
 0x1bd   : > { %v1070_v55 = vpop.permute.xlu0 %1069 }
 0x1be   : > { %v626_v54 = vpop.permute.xlu1 %625  ;;  %v1300_v57 = vsel %vm1287_vm5, %v1259_v53, %v1070_v55 }
 0x1bf   : > { %v4046_v59 = vld [vmem:[#allocation3 + $0xe8] sm:$0xff]  ;;  %1341 = vst.msk [vmem:[#allocation3 + $0x60] sm:$0xff] %vm1328_vm6, %v1300_v57  ;;  %v1195_v2 = vsel %vm198_vm0, %v355_v63, %v626_v54  ;;  %v4112_v53 = vpop.f32.mrf.mxu3 }
 0x1c0   : > { %3146 = vmatmul.msk.f32.gmra.mxu2 %vm1328_vm6, %v4046_v59  ;;  %3181 = vmatmul.msk.f32.gmra.mxu3 %vm1328_vm6, %v4046_v59  ;;  %v1236_v4 = vsel %vm1205_vm3, %v1195_v2, %v786_v29  ;;  %v1108_v14 = vpop.permute.xlu2 %1107  ;;  %v1179_v29 = vsel %vm198_vm0, %v339_v23, %v594_v56  ;;  %v4150_v23 = vld [vmem:[#allocation3 + $0x80] sm:$0xff] }
 0x1c5   : > { %v592_v61 = vpop.permute.xlu0 %591 }
 0x1c6   : > { %v946_v60 = vpop.permute.xlu1 %945  ;;  %v4053_v0 = vld [vmem:[#allocation3 + $0x60] sm:$0xff]  ;;  %v1178_v3 = vsel %vm198_vm0, %v338_v1, %v592_v61 }
 0x1c7   : > { %3129 = vmatmul.msk.f32.gmra.mxu0 %vm1328_vm6, %v4053_v0  ;;  %v1277_v6 = vsel %vm1246_vm4, %v1236_v4, %v946_v60  ;;  %v1219_v5 = vsel %vm1205_vm3, %v1178_v3, %v752_v42  ;;  %v340_v60 = vld [vmem:[#allocation2 + $0xb0] sm:$0xff] }
 0x1c8   : > { %v630_v26 = vpop.permute.xlu2 %629 }
 0x1c9   : > { %v1197_v49 = vsel %vm198_vm0, %v357_v45, %v630_v26 }
 0x1cd   : > { %v1106_v8 = vpop.permute.xlu0 %1105 }
 0x1ce   : > { %v912_v62 = vpop.permute.xlu1 %911  ;;  %v1318_v10 = vsel %vm1287_vm5, %v1277_v6, %v1106_v8  ;;  %v358_v8 = vld [vmem:[#allocation2 + $0x188] sm:$0xff] }
 0x1cf   : > { %v1260_v9 = vsel %vm1246_vm4, %v1219_v5, %v912_v62  ;;  %1359 = vst.msk [vmem:[#allocation3 + $0xf0] sm:$0xff] %vm1328_vm6, %v1318_v10  ;;  %v4125_v62 = vpop.f32.mrf.mxu3 }
 0x1d0   : > { %v1301_v12 = vsel %vm1287_vm5, %v1260_v9, %v1072_v52  ;;  %v950_v34 = vpop.permute.xlu2 %949 }
 0x1d1   : > { %1342 = vst.msk [vmem:[#allocation3 + $0x68] sm:$0xff] %vm1328_vm6, %v1301_v12 }
 0x1d5   : > { %v628_v19 = vpop.permute.xlu0 %627 }
 0x1d6   : > { %v788_v17 = vpop.permute.xlu1 %787  ;;  %v4073_v18 = vld [vmem:[#allocation3 + $0xf0] sm:$0xff]  ;;  %v1196_v25 = vsel %vm198_vm0, %v356_v20, %v628_v19  ;;  %v325_v20 = vld [vmem:[#allocation2] sm:$0xff] }
 0x1d7   : > { %3147 = vmatmul.msk.f32.gmra.mxu2 %vm1328_vm6, %v4073_v18  ;;  %3182 = vmatmul.msk.f32.gmra.mxu3 %vm1328_vm6, %v4073_v18  ;;  %v1237_v28 = vsel %vm1205_vm3, %v1196_v25, %v788_v17  ;;  %v4146_v25 = vpop.f32.mrf.mxu3 }
 0x1d8   : > { %v4079_v21 = vld [vmem:[#allocation3 + $0x68] sm:$0xff]  ;;  %v916_v48 = vpop.permute.xlu2 %915 }
 0x1d9   : > { %3130 = vmatmul.msk.f32.gmra.mxu0 %vm1328_vm6, %v4079_v21 }
 0x1dd   : > { %v948_v30 = vpop.permute.xlu0 %947 }
 0x1de   : > { %v754_v27 = vpop.permute.xlu1 %753  ;;  %v1278_v31 = vsel %vm1246_vm4, %v1237_v28, %v948_v30 }
 0x1df   : > { %v1319_v33 = vsel %vm1287_vm5, %v1278_v31, %v1108_v14  ;;  %v1220_v35 = vsel %vm1205_vm3, %v1179_v29, %v754_v27 }
 0x1e0   : > { %1360 = vst.msk [vmem:[#allocation3 + $0xf8] sm:$0xff] %vm1328_vm6, %v1319_v33  ;;  %v792_v63 = vpop.permute.xlu2 %791 }
 0x1e5   : > { %v914_v39 = vpop.permute.xlu0 %913 }
 0x1e6   : > { %v1074_v38 = vpop.permute.xlu1 %1073  ;;  %v1261_v40 = vsel %vm1246_vm4, %v1220_v35, %v914_v39  ;;  %v4163_v35 = vpop.f32.mrf.mxu3 }
 0x1e7   : > { %v1302_v41 = vsel %vm1287_vm5, %v1261_v40, %v1074_v38  ;;  %v4095_v42 = vld [vmem:[#allocation3 + $0xf8] sm:$0xff]  ;;  %v326_v38 = vld [vmem:[#allocation2 + $0x8] sm:$0xff] }
 0x1e8   : > { %1343 = vst.msk [vmem:[#allocation3 + $0x70] sm:$0xff] %vm1328_vm6, %v1302_v41  ;;  %3148 = vmatmul.msk.f32.gmra.mxu2 %vm1328_vm6, %v4095_v42  ;;  %3183 = vmatmul.msk.f32.gmra.mxu3 %vm1328_vm6, %v4095_v42  ;;  %v566_v10 = vpop.permute.xlu2 %565  ;;  %v4165_v40 = vld [vmem:[#allocation3 + $0x88] sm:$0xff] }
 0x1e9   : > { %v1165_v26 = vsel %vm198_vm0, %v325_v20, %v566_v10  ;;  %v291_v20 = vld [vmem:[%s3411_s20 + $0xf8] sm:$0xff] }
 0x1ea   : > { %324 = vst.msk [vmem:[#allocation2 + $0x1a2] sm:$0xff] %vm198_vm0, %v291_v20  ;;  %v402_v20 = vld [vmem:[#allocation2 + $0x1b9] sm:$0xff] }
 0x1ed   : > { %v790_v47 = vpop.permute.xlu0 %789 }
 0x1ee   : > { %v596_v46 = vpop.permute.xlu1 %595  ;;  %v1238_v52 = vsel %vm1205_vm3, %v1197_v49, %v790_v47 }
 0x1ef   : > { %v4105_v51 = vld [vmem:[#allocation3 + $0x70] sm:$0xff]  ;;  %v1279_v54 = vsel %vm1246_vm4, %v1238_v52, %v950_v34  ;;  %v1180_v56 = vsel %vm198_vm0, %v340_v60, %v596_v46  ;;  %v1867_v46 = vld [vmem:[#allocation3 + $0x20] sm:$0xff]  ;;  %v4175_v52 = vpop.f32.mrf.mxu2 }
 0x1f0   : > { %3131 = vmatmul.msk.f32.gmra.mxu0 %vm1328_vm6, %v4105_v51  ;;  %3224 = vmatmul.msk.f32.vlgmr.msrb.gmra.mxu3 %vm1328_vm6, %v3849_v16  ;;  %v1046_v27 = vpop.permute.xlu2 %1045 }
 0x1f5   : > { %v756_v57 = vpop.permute.xlu0 %755 }
 0x1f6   : > { %v1110_v55 = vpop.permute.xlu1 %1109  ;;  %v1221_v1 = vsel %vm1205_vm3, %v1180_v56, %v756_v57 }
 0x1f7   : > { %v1320_v61 = vsel %vm1287_vm5, %v1279_v54, %v1110_v55  ;;  %v1262_v2 = vsel %vm1246_vm4, %v1221_v1, %v916_v48  ;;  %v4177_v54 = vpop.f32.mrf.mxu3  ;;  %v4179_v55 = vpop.f32.mrf.mxu0 }
 0x1f8   : > { %1361 = vst.msk [vmem:[#allocation3 + $0x100] sm:$0xff] %vm1328_vm6, %v1320_v61  ;;  %3225 = vmatmul.msk.f32.gmra.mxu3 %vm1328_vm6, %v3882_v43  ;;  %v888_v49 = vpop.permute.xlu2 %887 }
 0x1fd   : > { %v1076_v3 = vpop.permute.xlu0 %1075 }
 0x1fe   : > { %v632_v4 = vpop.permute.xlu1 %631  ;;  %v1303_v6 = vsel %vm1287_vm5, %v1262_v2, %v1076_v3 }
 0x1ff   : > { %v4123_v5 = vld [vmem:[#allocation3 + $0x100] sm:$0xff]  ;;  %1344 = vst.msk [vmem:[#allocation3 + $0x78] sm:$0xff] %vm1328_vm6, %v1303_v6  ;;  %v1198_v9 = vsel %vm198_vm0, %v358_v8, %v632_v4  ;;  %v4192_v56 = vpop.f32.mrf.mxu3  ;;  %v4194_v1 = vpop.f32.mrf.mxu0  ;;  %v1371_v6 = vld [vmem:[#allocation3 + $0x10] sm:$0xff] }
 0x200   : > { %3149 = vmatmul.msk.f32.gmra.mxu2 %vm1328_vm6, %v4123_v5  ;;  %3226 = vmatmul.msk.f32.gmra.mxu3 %vm1328_vm6, %v3919_v11  ;;  %v1239_v12 = vsel %vm1205_vm3, %v1198_v9, %v792_v63  ;;  %v4190_v63 = vpop.f32.mrf.mxu2 }
 0x205   : > { %v952_v13 = vpop.permute.xlu0 %951 }
 0x206   : > { %v1112_v14 = vpop.permute.xlu1 %1111  ;;  %v1280_v15 = vsel %vm1246_vm4, %v1239_v12, %v952_v13  ;;  %v4135_v17 = vld [vmem:[#allocation3 + $0x78] sm:$0xff]  ;;  %v290_v13 = vld [vmem:[%s3411_s20 + $0xf0] sm:$0xff] }
 0x207   : > { %v1321_v19 = vsel %vm1287_vm5, %v1280_v15, %v1112_v14  ;;  %3132 = vmatmul.msk.f32.gmra.mxu0 %vm1328_vm6, %v4135_v17  ;;  %v4205_v3 = vpop.f32.mrf.mxu3  ;;  %v4207_v4 = vpop.f32.mrf.mxu0  ;;  %v1372_v12 = vld [vmem:[#allocation3 + $0x18] sm:$0xff]  ;;  %323 = vst.msk [vmem:[#allocation2 + $0x19a] sm:$0xff] %vm198_vm0, %v290_v13  ;;  %v4310_v13 = vld [vmem:[#allocation3 + $0xa0] sm:$0xff] }
 0x208   : > { %1362 = vst.msk [vmem:[#allocation3 + $0x108] sm:$0xff] %vm1328_vm6, %v1321_v19  ;;  %3227 = vmatmul.msk.f32.gmra.mxu3 %vm1328_vm6, %v3964_v24 }
 0x20d   : > { %v726_v28 = vpop.permute.xlu0 %725 }
 0x20e   : > { %v886_v30 = vpop.permute.xlu1 %885  ;;  %v1206_v31 = vsel %vm1205_vm3, %v1165_v26, %v726_v28  ;;  %v399_v22 = vld [vmem:[#allocation2 + $0x199] sm:$0xff] }
 0x20f   : > { %v1247_v33 = vsel %vm1246_vm4, %v1206_v31, %v886_v30  ;;  %3133 = vmatmul.msk.f32.gmra.mxu0 %vm1328_vm6, %v4150_v23  ;;  %v4155_v29 = vld [vmem:[#allocation3 + $0x108] sm:$0xff]  ;;  %v4218_v9 = vpop.f32.mrf.mxu3  ;;  %v4220_v10 = vpop.f32.mrf.mxu0  ;;  %633 = vrot.lane.b32.xlu1 %v399_v22, %s3358_s21  ;;  %v479_v30 = vld [vmem:[#allocation2 + $0x19b] sm:$0xff] }
 0x210   : > { %v1288_v34 = vsel %vm1287_vm5, %v1247_v33, %v1046_v27  ;;  %3150 = vmatmul.msk.f32.gmra.mxu2 %vm1328_vm6, %v4155_v29  ;;  %3228 = vmatmul.msk.f32.gmra.mxu3 %vm1328_vm6, %v3996_v7  ;;  %4816 = vst [vmem:[#allocation4_spill] sm:$0xff] %v4218_v9  ;;  %v1374_v31 = vld [vmem:[#allocation3 + $0x28] sm:$0xff]  ;;  %v519_v33 = vld [vmem:[#allocation2 + $0x19c] sm:$0xff] }
 0x211   : > { %1329 = vst.msk [vmem:[#allocation3] sm:$0xff] %vm1328_vm6, %v1288_v34  ;;  %953 = vrot.lane.b32.xlu0 %v479_v30, %s3360_s23 }
 0x215   : > { %v568_v39 = vpop.permute.xlu0 %567 }
 0x216   : > { %v1166_v41 = vsel %vm198_vm0, %v326_v38, %v568_v39  ;;  %v728_v45 = vpop.permute.xlu1 %727 }
 0x217   : > { %3134 = vmatmul.msk.f32.gmra.mxu0 %vm1328_vm6, %v4165_v40  ;;  %v1207_v48 = vsel %vm1205_vm3, %v1166_v41, %v728_v45  ;;  %v4232_v15 = vpop.f32.mrf.mxu3  ;;  %v4235_v19 = vpop.f32.mrf.mxu0  ;;  %1113 = vrot.lane.b32.xlu1 %v519_v33, %s3361_s24  ;;  %v440_v41 = vld [vmem:[#allocation2 + $0x1a2] sm:$0xff]  ;;  %v4273_v45 = vld [vmem:[#allocation3 + $0x90] sm:$0xff] }
 0x218   : > { %3188 = vmatmul.msk.f32.vlgmr.msrb.gmra.mxu2 %vm1328_vm6, %v1867_v46  ;;  %3229 = vmatmul.msk.f32.gmra.mxu3 %vm1328_vm6, %v4031_v36  ;;  %v1369_v47 = vld [vmem:[#allocation3] sm:$0xff]  ;;  %v1248_v57 = vsel %vm1246_vm4, %v1207_v48, %v888_v49  ;;  %4817 = vst [vmem:[#allocation5_spill] sm:$0xff] %v4232_v15  ;;  %v401_v49 = vld [vmem:[#allocation2 + $0x1b1] sm:$0xff] }
 0x219   : > { %3152 = vmatmul.msk.f32.vlgmr.msra.gmra.mxu1 %vm1328_vm6, %v1369_v47  ;;  %795 = vrot.lane.b32.xlu0 %v440_v41, %s3359_s22  ;;  %v4329_v41 = vld [vmem:[#allocation3 + $0xa8] sm:$0xff] }
 0x21d   : > { %v1048_v60 = vpop.permute.xlu0 %1047 }
 0x21e   : > { %v1289_v61 = vsel %vm1287_vm5, %v1248_v57, %v1048_v60  ;;  %v4291_v57 = vld [vmem:[#allocation3 + $0x98] sm:$0xff] }
 0x21f   : > { %1330 = vst.msk [vmem:[#allocation3 + $0x8] sm:$0xff] %vm1328_vm6, %v1289_v61  ;;  %3260 = vmatmul.msk.f32.vlgmr.msrb.gmra.mxu0 %vm1328_vm6, %v3919_v11  ;;  %v4248_v27 = vpop.f32.mrf.mxu3  ;;  %v4251_v28 = vpop.f32.mrf.mxu0  ;;  %v441_v60 = vld [vmem:[#allocation2 + $0x1b2] sm:$0xff]  ;;  %v439_v61 = vld [vmem:[#allocation2 + $0x19a] sm:$0xff] }
 0x220   : > { %3189 = vmatmul.msk.f32.gmra.mxu2 %vm1328_vm6, %v3815_v50  ;;  %3230 = vmatmul.msk.f32.gmra.mxu3 %vm1328_vm6, %v4053_v0  ;;  %v4203_v50 = vpop.f32.mrf.mxu2  ;;  %4818 = vst [vmem:[#allocation6_spill] sm:$0xff] %v4248_v27 }
 0x221   : > { %637 = vrot.lane.b32.xlu0 %v401_v49, %s3358_s21  ;;  %793 = vrot.lane.b32.xlu2 %v439_v61, %s3359_s22  ;;  %v520_v49 = vld [vmem:[#allocation2 + $0x1a4] sm:$0xff] }
 0x226   : > { %v1370_v2 = vld [vmem:[#allocation3 + $0x8] sm:$0xff] }
 0x227   : > { %3153 = vmatmul.msk.f32.gmra.mxu1 %vm1328_vm6, %v1370_v2  ;;  %3261 = vmatmul.msk.f32.gmra.mxu0 %vm1328_vm6, %v3964_v24  ;;  %v4263_v38 = vpop.f32.mrf.mxu3  ;;  %v4266_v39 = vpop.f32.mrf.mxu0 }
 0x228   : > { %3190 = vmatmul.msk.f32.gmra.mxu2 %vm1328_vm6, %v3849_v16  ;;  %3231 = vmatmul.msk.f32.gmra.mxu3 %vm1328_vm6, %v4079_v21  ;;  %v4216_v8 = vpop.f32.mrf.mxu2  ;;  %4819 = vst [vmem:[#allocation7_spill] sm:$0xff] %v4263_v38  ;;  %v523_v38 = vld [vmem:[#allocation2 + $0x1cc] sm:$0xff] }
 0x22f   : > { %3154 = vmatmul.msk.f32.gmra.mxu1 %vm1328_vm6, %v1371_v6  ;;  %3262 = vmatmul.msk.f32.gmra.mxu0 %vm1328_vm6, %v3996_v7  ;;  %v4281_v48 = vpop.f32.mrf.mxu3 }
 0x230   : > { %3191 = vmatmul.msk.f32.gmra.mxu2 %vm1328_vm6, %v3882_v43  ;;  %3232 = vmatmul.msk.f32.gmra.mxu3 %vm1328_vm6, %v4105_v51  ;;  %v4230_v14 = vpop.f32.mrf.mxu2  ;;  %4820 = vst [vmem:[#allocation8_spill] sm:$0xff] %v4281_v48 }
 0x237   : > { %3155 = vmatmul.msk.f32.gmra.mxu1 %vm1328_vm6, %v1372_v12  ;;  %3263 = vmatmul.msk.f32.gmra.mxu0 %vm1328_vm6, %v4031_v36 }
 0x238   : > { %3192 = vmatmul.msk.f32.gmra.mxu2 %vm1328_vm6, %v3919_v11  ;;  %3233 = vmatmul.msk.f32.gmra.mxu3 %vm1328_vm6, %v4135_v17  ;;  %v4246_v26 = vpop.f32.mrf.mxu2 }
 0x23f   : > { %3156 = vmatmul.msk.f32.gmra.mxu1 %vm1328_vm6, %v1867_v46  ;;  %3264 = vmatmul.msk.f32.gmra.mxu0 %vm1328_vm6, %v4053_v0  ;;  %v480_v46 = vld [vmem:[#allocation2 + $0x1a3] sm:$0xff] }
 0x240   : > { %3193 = vmatmul.msk.f32.gmra.mxu2 %vm1328_vm6, %v3964_v24  ;;  %3234 = vmatmul.msk.f32.gmra.mxu3 %vm1328_vm6, %v4150_v23  ;;  %v4261_v34 = vpop.f32.mrf.mxu2 }
 0x241   : > { %955 = vrot.lane.b32.xlu1 %v480_v46, %s3360_s23  ;;  %v522_v46 = vld [vmem:[#allocation2 + $0x1bc] sm:$0xff] }
 0x243   : > { %v4300_v6 = vpop.f32.mrf.mxu3 }
 0x244   : > { %4821 = vst [vmem:[#allocation9_spill] sm:$0xff] %v4300_v6  ;;  %v442_v6 = vld [vmem:[#allocation2 + $0x1ba] sm:$0xff] }
 0x247   : > { %3157 = vmatmul.msk.f32.gmra.mxu1 %vm1328_vm6, %v1374_v31  ;;  %3265 = vmatmul.msk.f32.gmra.mxu0 %vm1328_vm6, %v4079_v21  ;;  %v400_v31 = vld [vmem:[#allocation2 + $0x1a1] sm:$0xff] }
 0x248   : > { %3194 = vmatmul.msk.f32.gmra.mxu2 %vm1328_vm6, %v3996_v7  ;;  %3235 = vmatmul.msk.f32.gmra.mxu3 %vm1328_vm6, %v4165_v40  ;;  %v4279_v47 = vpop.f32.mrf.mxu2 }
 0x249   : > { %797 = vrot.lane.b32.xlu1 %v441_v60, %s3359_s22  ;;  %635 = vrot.lane.b32.xlu2 %v400_v31, %s3358_s21  ;;  %v483_v31 = vld [vmem:[#allocation2 + $0x1cb] sm:$0xff] }
 0x24f   : > { %3158 = vmatmul.msk.f32.gmra.mxu1 %vm1328_vm6, %v3849_v16  ;;  %3266 = vmatmul.msk.f32.gmra.mxu0 %vm1328_vm6, %v4105_v51  ;;  %v4284_v16 = vpop.f32.mrf.mxu0 }
 0x250   : > { %3195 = vmatmul.msk.f32.gmra.mxu2 %vm1328_vm6, %v4031_v36  ;;  %3236 = vmatmul.msk.f32.gmra.mxu3 %vm1328_vm6, %v4273_v45  ;;  %v4298_v2 = vpop.f32.mrf.mxu2 }
 0x251   : > { %639 = vrot.lane.b32.xlu1 %v402_v20, %s3358_s21  ;;  %1115 = vrot.lane.b32.xlu2 %v520_v49, %s3361_s24  ;;  %v4346_v20 = vld [vmem:[#allocation3 + $0xb0] sm:$0xff] }
 0x257   : > { %3159 = vmatmul.msk.f32.gmra.mxu1 %vm1328_vm6, %v3882_v43  ;;  %3267 = vmatmul.msk.f32.gmra.mxu0 %vm1328_vm6, %v4135_v17  ;;  %v521_v43 = vld [vmem:[#allocation2 + $0x1b4] sm:$0xff]  ;;  %v4303_v12 = vpop.f32.mrf.mxu0 }
 0x258   : > { %3196 = vmatmul.msk.f32.gmra.mxu2 %vm1328_vm6, %v4053_v0  ;;  %3237 = vmatmul.msk.f32.gmra.mxu3 %vm1328_vm6, %v4291_v57  ;;  %v4316_v22 = vpop.f32.mrf.mxu2 }
 0x259   : > { %1117 = vrot.lane.b32.xlu0 %v521_v43, %s3361_s24  ;;  %4822 = vst [vmem:[#allocation10_spill] sm:$0xff] %v4316_v22  ;;  %1119 = vrot.lane.b32.xlu1 %v522_v46, %s3361_s24  ;;  %v443_v43 = vld [vmem:[#allocation2 + $0x1ca] sm:$0xff] }
 0x25a   : > { %v4318_v30 = vpop.f32.mrf.mxu3 }
 0x25b   : > { %4823 = vst [vmem:[#allocation11_spill] sm:$0xff] %v4318_v30  ;;  %v4363_v30 = vld [vmem:[#allocation3 + $0xb8] sm:$0xff] }
 0x25f   : > { %3160 = vmatmul.msk.f32.gmra.mxu1 %vm1328_vm6, %v3919_v11  ;;  %3268 = vmatmul.msk.f32.gmra.mxu0 %vm1328_vm6, %v4150_v23  ;;  %v482_v11 = vld [vmem:[#allocation2 + $0x1bb] sm:$0xff]  ;;  %v4321_v33 = vpop.f32.mrf.mxu0 }
 0x260   : > { %3197 = vmatmul.msk.f32.gmra.mxu2 %vm1328_vm6, %v4079_v21  ;;  %3238 = vmatmul.msk.f32.gmra.mxu3 %vm1328_vm6, %v4310_v13  ;;  %v4335_v60 = vpop.f32.mrf.mxu2 }
 0x261   : > { %959 = vrot.lane.b32.xlu0 %v482_v11, %s3360_s23  ;;  %4824 = vst [vmem:[#allocation12_spill] sm:$0xff] %v4335_v60  ;;  %v481_v11 = vld [vmem:[#allocation2 + $0x1b3] sm:$0xff]  ;;  %961 = vrot.lane.b32.xlu1 %v483_v31, %s3360_s23 }
 0x262   : > { %957 = vrot.lane.b32.xlu2 %v481_v11, %s3360_s23  ;;  %v444_v31 = vld [vmem:[#allocation2 + $0x1d2] sm:$0xff] }
 0x267   : > { %3161 = vmatmul.msk.f32.gmra.mxu1 %vm1328_vm6, %v3964_v24  ;;  %3269 = vmatmul.msk.f32.gmra.mxu0 %vm1328_vm6, %v4165_v40  ;;  %v4338_v24 = vpop.f32.mrf.mxu0 }
 0x268   : > { %3198 = vmatmul.msk.f32.gmra.mxu2 %vm1328_vm6, %v4105_v51  ;;  %3239 = vmatmul.msk.f32.gmra.mxu3 %vm1328_vm6, %v4329_v41  ;;  %v4352_v46 = vpop.f32.mrf.mxu2 }
 0x269   : > { %801 = vrot.lane.b32.xlu0 %v443_v43, %s3359_s22  ;;  %4825 = vst [vmem:[#allocation13_spill] sm:$0xff] %v4352_v46  ;;  %803 = vrot.lane.b32.xlu1 %v444_v31, %s3359_s22 }
 0x26a   : > { %799 = vrot.lane.b32.xlu2 %v442_v6, %s3359_s22 }
 0x26b   : > { %v1863_v61 = vpop.f32.mrf.mxu3 }
 0x26f   : > { %3162 = vmatmul.msk.f32.gmra.mxu1 %vm1328_vm6, %v3996_v7  ;;  %3270 = vmatmul.msk.f32.gmra.mxu0 %vm1328_vm6, %v4273_v45  ;;  %v4355_v43 = vpop.f32.mrf.mxu0  ;;  %v404_v7 = vld [vmem:[#allocation2 + $0x1d1] sm:$0xff] }
 0x270   : > { %3199 = vmatmul.msk.f32.gmra.mxu2 %vm1328_vm6, %v4135_v17  ;;  %3240 = vmatmul.msk.f32.gmra.mxu3 %vm1328_vm6, %v4346_v20  ;;  %v4369_v11 = vpop.f32.mrf.mxu2 }
 0x271   : > { %643 = vrot.lane.b32.xlu0 %v404_v7, %s3358_s21  ;;  %4826 = vst [vmem:[#allocation14_spill] sm:$0xff] %v4369_v11  ;;  %v524_v7 = vld [vmem:[#allocation2 + $0x1d4] sm:$0xff]  ;;  %v403_v11 = vld [vmem:[#allocation2 + $0x1c9] sm:$0xff] }
 0x272   : > { %641 = vrot.lane.b32.xlu2 %v403_v11, %s3358_s21 }
 0x273   : > { %v2300_v49 = vpop.f32.mrf.mxu3 }
 0x277   : > { %3163 = vmatmul.msk.f32.gmra.mxu1 %vm1328_vm6, %v4031_v36  ;;  %3271 = vmatmul.msk.f32.gmra.mxu0 %vm1328_vm6, %v4291_v57  ;;  %v4374_v36 = vpop.f32.mrf.mxu0 }
 0x278   : > { %3200 = vmatmul.msk.f32.gmra.mxu2 %vm1328_vm6, %v4150_v23  ;;  %3241 = vmatmul.msk.f32.gmra.mxu3 %vm1328_vm6, %v4363_v30  ;;  %v4382_v23 = vld [vmem:[#allocation3 + $0xc0] sm:$0xff]  ;;  %v4388_v31 = vpop.f32.mrf.mxu2 }
 0x279   : > { %1123 = vrot.lane.b32.xlu0 %v524_v7, %s3361_s24  ;;  %4827 = vst [vmem:[#allocation15_spill] sm:$0xff] %v4388_v31 }
 0x27a   : > { %1121 = vrot.lane.b32.xlu2 %v523_v38, %s3361_s24 }
 0x27b   : > { %v4371_v48 = vpop.f32.mrf.mxu3  ;;  %v794_v60 = vpop.permute.xlu2 %793 }
 0x27f   : > { %3164 = vmatmul.msk.f32.gmra.mxu1 %vm1328_vm6, %v4053_v0  ;;  %3272 = vmatmul.msk.f32.gmra.mxu0 %vm1328_vm6, %v4310_v13  ;;  %v4399_v0 = vld [vmem:[#allocation3 + $0xc8] sm:$0xff] }
 0x280   : > { %3201 = vmatmul.msk.f32.gmra.mxu2 %vm1328_vm6, %v4165_v40  ;;  %3242 = vmatmul.msk.f32.gmra.mxu3 %vm1328_vm6, %v4382_v23 }
 0x283   : > { %v4390_v6 = vpop.f32.mrf.mxu3  ;;  %v4405_v40 = vpop.f32.mrf.mxu2 }
 0x284   : > { %v4392_v7 = vpop.f32.mrf.mxu0  ;;  %4828 = vst [vmem:[#allocation16_spill] sm:$0xff] %v4405_v40  ;;  %v484_v40 = vld [vmem:[#allocation2 + $0x1d3] sm:$0xff] }
 0x285   : > { %963 = vrot.lane.b32.xlu2 %v484_v40, %s3360_s23 }
 0x287   : > { %3165 = vmatmul.msk.f32.gmra.mxu1 %vm1328_vm6, %v4079_v21  ;;  %3273 = vmatmul.msk.f32.gmra.mxu0 %vm1328_vm6, %v4329_v41 }
 0x288   : > { %3202 = vmatmul.msk.f32.gmra.mxu2 %vm1328_vm6, %v4273_v45  ;;  %3243 = vmatmul.msk.f32.gmra.mxu3 %vm1328_vm6, %v4399_v0 }
 0x28b   : > { %v4407_v31 = vpop.f32.mrf.mxu3 }
 0x28c   : > { %v4409_v11 = vpop.f32.mrf.mxu0 }
 0x28f   : > { %3166 = vmatmul.msk.f32.gmra.mxu1 %vm1328_vm6, %v4105_v51  ;;  %3274 = vmatmul.msk.f32.gmra.mxu0 %vm1328_vm6, %v4346_v20 }
 0x290   : > { %3203 = vmatmul.msk.f32.gmra.mxu2 %vm1328_vm6, %v4291_v57  ;;  %3244 = vmatmul.msk.f32.gmra.mxu3 %vm1328_vm6, %v3951_v37 }
 0x293   : > { %v1651_v21 = vpop.f32.mrf.mxu2  ;;  %v4420_v45 = vpop.f32.mrf.mxu3 }
 0x294   : > { %v4422_v46 = vadd.f32 %v1863_v61, %v1651_v21  ;;  %v4424_v27 = vpop.f32.mrf.mxu0 }
 0x296   : > { %4829 = vst [vmem:[#allocation17_spill] sm:$0xff] %v4422_v46  ;;  %v1770_v51 = vpop.f32.mrf.mxu1 }
 0x297   : > { %3167 = vmatmul.msk.f32.gmra.mxu1 %vm1328_vm6, %v4135_v17  ;;  %3275 = vmatmul.msk.f32.gmra.mxu0 %vm1328_vm6, %v4363_v30  ;;  %v1771_v37 = vadd.f32 %v1770_v51, %v4179_v55  ;;  %v4441_v17 = vld [vmem:[%s4814_s3] ss:$0 sm:$0xff] }
 0x298   : > { %3204 = vmatmul.msk.f32.gmra.mxu2 %vm1328_vm6, %v4310_v13  ;;  %3245 = vmatmul.msk.f32.gmra.mxu3 %vm1328_vm6, %v3989_v58 }
 0x29b   : > { %v2019_v38 = vpop.f32.mrf.mxu2  ;;  %v4436_v57 = vpop.f32.mrf.mxu3 }
 0x29c   : > { %v2115_v61 = vadd.f32 %v2019_v38, %v1771_v37  ;;  %v2581_v40 = vpop.f32.mrf.mxu0 }
 0x29e   : > { %v2396_v21 = vadd.f32 %v2300_v49, %v2115_v61 }
 0x29f   : > { %3276 = vmatmul.msk.f32.gmra.mxu0 %vm1328_vm6, %v4382_v23 }
 0x2a0   : > { %v2677_v13 = vadd.f32 %v2581_v40, %v2396_v21  ;;  %3205 = vmatmul.msk.f32.gmra.mxu2 %vm1328_vm6, %v4329_v41  ;;  %3246 = vmatmul.msk.f32.gmra.mxu3 %vm1328_vm6, %v4018_v32 }
 0x2a2   : > { %v2711_v58 = vadd.f32 %v4441_v17, %v2677_v13 }
 0x2a3   : > { %v2022_v55 = vpop.f32.mrf.mxu2  ;;  %v4450_v51 = vpop.f32.mrf.mxu3 }
 0x2a4   : > { %v2743_v49 = vmax.f32 %v2711_v58, 0.0  ;;  %v1773_v37 = vpop.f32.mrf.mxu1  ;;  %v2584_v38 = vpop.f32.mrf.mxu0 }
 0x2a5   : > { %v1774_v61 = vadd.f32 %v1773_v37, %v4194_v1  ;;  %v4465_v37 = vld [vmem:[#allocation3 + $0xd0] sm:$0xff] }
 0x2a6   : > { %3292 = vmatmul.msk.f32.vlgmr.msrb.gmra.mxu1 %vm1205_vm3, %v2743_v49 }
 0x2a7   : > { %v2116_v46 = vadd.f32 %v2022_v55, %v1774_v61  ;;  %3277 = vmatmul.msk.f32.gmra.mxu0 %vm1328_vm6, %v4399_v0 }
 0x2a8   : > { %3206 = vmatmul.msk.f32.gmra.mxu2 %vm1328_vm6, %v4346_v20  ;;  %3247 = vmatmul.msk.f32.gmra.mxu3 %vm1328_vm6, %v4046_v59 }
 0x2a9   : > { %v2397_v41 = vadd.f32 %v4371_v48, %v2116_v46 }
 0x2ab   : > { %v2678_v40 = vadd.f32 %v2584_v38, %v2397_v41  ;;  %v2025_v21 = vpop.f32.mrf.mxu2  ;;  %v4461_v13 = vpop.f32.mrf.mxu3 }
 0x2ac   : > { %v1776_v58 = vpop.f32.mrf.mxu1  ;;  %v2587_v1 = vpop.f32.mrf.mxu0 }
 0x2ad   : > { %v2712_v49 = vadd.f32 %v4441_v17, %v2678_v40  ;;  %v1777_v55 = vadd.f32 %v1776_v58, %v4207_v4 }
 0x2af   : > { %v2117_v61 = vadd.f32 %v2025_v21, %v1777_v55  ;;  %3278 = vmatmul.msk.f32.gmra.mxu0 %vm1328_vm6, %v4465_v37  ;;  %v2744_v20 = vmax.f32 %v2712_v49, 0.0  ;;  %v634_v49 = vpop.permute.xlu1 %633  ;;  %v4479_v55 = vld [vmem:[#allocation3 + $0xd8] sm:$0xff] }
 0x2b0   : > { %3207 = vmatmul.msk.f32.gmra.mxu2 %vm1328_vm6, %v4363_v30  ;;  %3248 = vmatmul.msk.f32.gmra.mxu3 %vm1328_vm6, %v4073_v18  ;;  %v359_v30 = vld [vmem:[#allocation2 + $0x198] sm:$0xff] }
 0x2b1   : > { %v2398_v48 = vadd.f32 %v4390_v6, %v2117_v61  ;;  %3293 = vmatmul.msk.f32.gmra.mxu1 %vm1205_vm3, %v2744_v20 }
 0x2b3   : > { %v2679_v46 = vadd.f32 %v2587_v1, %v2398_v48  ;;  %v2028_v38 = vpop.f32.mrf.mxu2  ;;  %v4475_v4 = vpop.f32.mrf.mxu3 }
 0x2b4   : > { %v1779_v41 = vpop.f32.mrf.mxu1  ;;  %v2590_v40 = vpop.f32.mrf.mxu0 }
 0x2b5   : > { %v2713_v21 = vadd.f32 %v4441_v17, %v2679_v46  ;;  %v1780_v58 = vadd.f32 %v1779_v41, %v4220_v10  ;;  %v954_v1 = vpop.permute.xlu0 %953  ;;  %v1199_v10 = vsel %vm198_vm0, %v359_v30, %v634_v49  ;;  %v360_v49 = vld [vmem:[#allocation2 + $0x1a0] sm:$0xff] }
 0x2b6   : > { %v1240_v41 = vsel %vm1205_vm3, %v1199_v10, %v794_v60 }
 0x2b7   : > { %v2118_v15 = vadd.f32 %v2028_v38, %v1780_v58  ;;  %3279 = vmatmul.msk.f32.gmra.mxu0 %vm1328_vm6, %v4479_v55  ;;  %v2745_v6 = vmax.f32 %v2713_v21, 0.0  ;;  %v1281_v22 = vsel %vm1246_vm4, %v1240_v41, %v954_v1  ;;  %v1114_v9 = vpop.permute.xlu1 %1113 }
 0x2b8   : > { %3208 = vmatmul.msk.f32.gmra.mxu2 %vm1328_vm6, %v4382_v23  ;;  %3249 = vmatmul.msk.f32.gmra.mxu3 %vm1328_vm6, %v4095_v42 }
 0x2b9   : > { %v2399_v61 = vadd.f32 %v4407_v31, %v2118_v15  ;;  %3294 = vmatmul.msk.f32.gmra.mxu1 %vm1205_vm3, %v2745_v6  ;;  %v1322_v15 = vsel %vm1287_vm5, %v1281_v22, %v1114_v9  ;;  %v636_v31 = vpop.permute.xlu2 %635 }
 0x2ba   : > { %1363 = vst.msk [vmem:[#allocation3 + $0x110] sm:$0xff] %vm1328_vm6, %v1322_v15 }
 0x2bb   : > { %v2680_v20 = vadd.f32 %v2590_v40, %v2399_v61  ;;  %v2031_v48 = vpop.f32.mrf.mxu2  ;;  %v4492_v58 = vpop.f32.mrf.mxu3 }
 0x2bc   : > { %v1782_v46 = vpop.f32.mrf.mxu1  ;;  %v2593_v38 = vpop.f32.mrf.mxu0 }
 0x2bd   : > { %v2714_v21 = vadd.f32 %v4441_v17, %v2680_v20  ;;  %v1783_v23 = vadd.f32 %v1782_v46, %v4235_v19  ;;  %v796_v60 = vpop.permute.xlu0 %795 }
 0x2bf   : > { %v2119_v6 = vadd.f32 %v2031_v48, %v1783_v23  ;;  %3280 = vmatmul.msk.f32.gmra.mxu0 %vm1328_vm6, %v4018_v32  ;;  %v2746_v40 = vmax.f32 %v2714_v21, 0.0  ;;  %v1200_v32 = vsel %vm198_vm0, %v360_v49, %v636_v31  ;;  %v956_v20 = vpop.permute.xlu1 %955 }
 0x2c0   : > { %3209 = vmatmul.msk.f32.gmra.mxu2 %vm1328_vm6, %v4399_v0  ;;  %3250 = vmatmul.msk.f32.gmra.mxu3 %vm1328_vm6, %v4123_v5  ;;  %v1241_v0 = vsel %vm1205_vm3, %v1200_v32, %v796_v60 }
 0x2c1   : > { %v2400_v19 = vadd.f32 %v4420_v45, %v2119_v6  ;;  %3295 = vmatmul.msk.f32.gmra.mxu1 %vm1205_vm3, %v2746_v40  ;;  %v1282_v48 = vsel %vm1246_vm4, %v1241_v0, %v956_v20  ;;  %v1116_v46 = vpop.permute.xlu2 %1115  ;;  %v361_v40 = vld [vmem:[#allocation2 + $0x1b0] sm:$0xff] }
 0x2c2   : > { %v1323_v21 = vsel %vm1287_vm5, %v1282_v48, %v1116_v46 }
 0x2c3   : > { %v2681_v9 = vadd.f32 %v2593_v38, %v2400_v19  ;;  %v2034_v22 = vpop.f32.mrf.mxu2  ;;  %v4511_v45 = vpop.f32.mrf.mxu3  ;;  %1364 = vst.msk [vmem:[#allocation3 + $0x118] sm:$0xff] %vm1328_vm6, %v1323_v21 }
 0x2c4   : > { %v1785_v30 = vpop.f32.mrf.mxu1  ;;  %v2596_v1 = vpop.f32.mrf.mxu0 }
 0x2c5   : > { %v2715_v61 = vadd.f32 %v4441_v17, %v2681_v9  ;;  %v1786_v10 = vadd.f32 %v1785_v30, %v4251_v28  ;;  %v638_v23 = vpop.permute.xlu0 %637  ;;  %v4525_v9 = vld [vmem:[#allocation3 + $0x110] sm:$0xff] }
 0x2c7   : > { %v2120_v41 = vadd.f32 %v2034_v22, %v1786_v10  ;;  %3281 = vmatmul.msk.f32.gmra.mxu0 %vm1328_vm6, %v4046_v59  ;;  %v2747_v38 = vmax.f32 %v2715_v61, 0.0  ;;  %v798_v22 = vpop.permute.xlu1 %797 }
 0x2c8   : > { %3210 = vmatmul.msk.f32.gmra.mxu2 %vm1328_vm6, %v4465_v37  ;;  %3251 = vmatmul.msk.f32.gmra.mxu3 %vm1328_vm6, %v4155_v29  ;;  %v1201_v37 = vsel %vm198_vm0, %v361_v40, %v638_v23 }
 0x2c9   : > { %v2401_v28 = vadd.f32 %v4436_v57, %v2120_v41  ;;  %3296 = vmatmul.msk.f32.gmra.mxu1 %vm1205_vm3, %v2747_v38  ;;  %v1242_v49 = vsel %vm1205_vm3, %v1201_v37, %v798_v22  ;;  %v958_v30 = vpop.permute.xlu2 %957 }
 0x2ca   : > { %v1283_v32 = vsel %vm1246_vm4, %v1242_v49, %v958_v30  ;;  %v4544_v38 = vld [vmem:[#allocation3 + $0x118] sm:$0xff] }
 0x2cb   : > { %v2682_v15 = vadd.f32 %v2596_v1, %v2401_v28  ;;  %v2037_v31 = vpop.f32.mrf.mxu2  ;;  %v4537_v10 = vpop.f32.mrf.mxu3 }
 0x2cc   : > { %v1788_v6 = vpop.f32.mrf.mxu1  ;;  %v2599_v59 = vpop.f32.mrf.mxu0 }
 0x2cd   : > { %v2716_v60 = vadd.f32 %v4441_v17, %v2682_v15  ;;  %v1789_v19 = vadd.f32 %v1788_v6, %v4266_v39  ;;  %v1118_v61 = vpop.permute.xlu0 %1117 }
 0x2ce   : > { %v1324_v39 = vsel %vm1287_vm5, %v1283_v32, %v1118_v61 }
 0x2cf   : > { %v2121_v57 = vadd.f32 %v2037_v31, %v1789_v19  ;;  %3282 = vmatmul.msk.f32.gmra.mxu0 %vm1328_vm6, %v4073_v18  ;;  %v2748_v1 = vmax.f32 %v2716_v60, 0.0  ;;  %1365 = vst.msk [vmem:[#allocation3 + $0x120] sm:$0xff] %vm1328_vm6, %v1324_v39  ;;  %v640_v21 = vpop.permute.xlu1 %639  ;;  %v362_v31 = vld [vmem:[#allocation2 + $0x1b8] sm:$0xff] }
 0x2d0   : > { %3211 = vmatmul.msk.f32.gmra.mxu2 %vm1328_vm6, %v4479_v55  ;;  %3252 = vmatmul.msk.f32.gmra.mxu3 %vm1328_vm6, %v4525_v9 }
 0x2d1   : > { %v2402_v0 = vadd.f32 %v4450_v51, %v2121_v57  ;;  %3297 = vmatmul.msk.f32.gmra.mxu1 %vm1205_vm3, %v2748_v1  ;;  %v800_v23 = vpop.permute.xlu2 %799  ;;  %v1891_v51 = vld [vmem:[#allocation3 + $0xe0] sm:$0xff] }
 0x2d3   : > { %v2683_v18 = vadd.f32 %v2599_v59, %v2402_v0  ;;  %v2040_v20 = vpop.f32.mrf.mxu2  ;;  %v4554_v40 = vpop.f32.mrf.mxu3  ;;  %v1892_v0 = vld [vmem:[#allocation3 + $0xe8] sm:$0xff] }
 0x2d4   : > { %v1791_v48 = vpop.f32.mrf.mxu1  ;;  %v2602_v46 = vpop.f32.mrf.mxu0 }
 0x2d5   : > { %v2717_v41 = vadd.f32 %v4441_v17, %v2683_v18  ;;  %v1792_v55 = vadd.f32 %v1791_v48, %v4284_v16  ;;  %v960_v6 = vpop.permute.xlu0 %959  ;;  %v1202_v16 = vsel %vm198_vm0, %v362_v31, %v640_v21 }
 0x2d6   : > { %v1243_v22 = vsel %vm1205_vm3, %v1202_v16, %v800_v23  ;;  %v4560_v1 = vld [vmem:[#allocation3 + $0x120] sm:$0xff] }
 0x2d7   : > { %v2122_v28 = vadd.f32 %v2040_v20, %v1792_v55  ;;  %3283 = vmatmul.msk.f32.gmra.mxu0 %vm1328_vm6, %v4095_v42  ;;  %v2749_v15 = vmax.f32 %v2717_v41, 0.0  ;;  %v1284_v57 = vsel %vm1246_vm4, %v1243_v22, %v960_v6  ;;  %v363_v41 = vld [vmem:[#allocation2 + $0x1c8] sm:$0xff] }
 0x2d8   : > { %3212 = vmatmul.msk.f32.gmra.mxu2 %vm1328_vm6, %v1891_v51  ;;  %3253 = vmatmul.msk.f32.gmra.mxu3 %vm1328_vm6, %v4544_v38 }
 0x2d9   : > { %v2403_v59 = vadd.f32 %v4461_v13, %v2122_v28  ;;  %3298 = vmatmul.msk.f32.gmra.mxu1 %vm1205_vm3, %v2749_v15  ;;  %v1120_v13 = vpop.permute.xlu1 %1119  ;;  %v642_v61 = vpop.permute.xlu2 %641 }
 0x2da   : > { %v1325_v32 = vsel %vm1287_vm5, %v1284_v57, %v1120_v13  ;;  %v1203_v23 = vsel %vm198_vm0, %v363_v41, %v642_v61  ;;  %v1894_v41 = vld [vmem:[#allocation3 + $0xf8] sm:$0xff] }
 0x2db   : > { %v2684_v60 = vadd.f32 %v2602_v46, %v2403_v59  ;;  %v2043_v19 = vpop.f32.mrf.mxu2  ;;  %1366 = vst.msk [vmem:[#allocation3 + $0x128] sm:$0xff] %vm1328_vm6, %v1325_v32  ;;  %v4572_v28 = vpop.f32.mrf.mxu3  ;;  %v364_v32 = vld [vmem:[#allocation2 + $0x1d0] sm:$0xff] }
 0x2dc   : > { %v1794_v42 = vpop.f32.mrf.mxu1  ;;  %v2605_v37 = vpop.f32.mrf.mxu0 }
 0x2dd   : > { %v2718_v49 = vadd.f32 %v4441_v17, %v2684_v60  ;;  %v1795_v30 = vadd.f32 %v1794_v42, %v4303_v12  ;;  %v802_v20 = vpop.permute.xlu0 %801  ;;  %v1893_v42 = vld [vmem:[#allocation3 + $0xf0] sm:$0xff] }
 0x2de   : > { %v1244_v31 = vsel %vm1205_vm3, %v1203_v23, %v802_v20 }
 0x2df   : > { %v2123_v39 = vadd.f32 %v2043_v19, %v1795_v30  ;;  %3284 = vmatmul.msk.f32.gmra.mxu0 %vm1328_vm6, %v4123_v5  ;;  %v2750_v18 = vmax.f32 %v2718_v49, 0.0 }
 0x2e0   : > { %3213 = vmatmul.msk.f32.gmra.mxu2 %vm1328_vm6, %v1892_v0  ;;  %3254 = vmatmul.msk.f32.gmra.mxu3 %vm1328_vm6, %v4560_v1 }
 0x2e1   : > { %v2404_v12 = vadd.f32 %v4475_v4, %v2123_v39  ;;  %3299 = vmatmul.msk.f32.gmra.mxu1 %vm1205_vm3, %v2750_v18  ;;  %v962_v6 = vpop.permute.xlu1 %961  ;;  %v1122_v59 = vpop.permute.xlu2 %1121 }
 0x2e2   : > { %v1285_v4 = vsel %vm1246_vm4, %v1244_v31, %v962_v6  ;;  %v4578_v16 = vld [vmem:[#allocation3 + $0x128] sm:$0xff] }
 0x2e3   : > { %v2685_v48 = vadd.f32 %v2605_v37, %v2404_v12  ;;  %v2046_v46 = vpop.f32.mrf.mxu2  ;;  %v1326_v37 = vsel %vm1287_vm5, %v1285_v4, %v1122_v59 }
 0x2e4   : > { %v1797_v55 = vpop.f32.mrf.mxu1  ;;  %v2608_v21 = vpop.f32.mrf.mxu0  ;;  %1367 = vst.msk [vmem:[#allocation3 + $0x130] sm:$0xff] %vm1328_vm6, %v1326_v37 }
 0x2e5   : > { %v2719_v51 = vadd.f32 %v4441_v17, %v2685_v48  ;;  %v1798_v15 = vadd.f32 %v1797_v55, %v4321_v33  ;;  %v644_v22 = vpop.permute.xlu0 %643  ;;  %v2342_v48 = vpop.f32.mrf.mxu3 }
 0x2e6   : > { %v1204_v0 = vsel %vm198_vm0, %v364_v32, %v644_v22 }
 0x2e7   : > { %v2751_v60 = vmax.f32 %v2719_v51, 0.0  ;;  %v2124_v19 = vadd.f32 %v2046_v46, %v1798_v15  ;;  %3285 = vmatmul.msk.f32.gmra.mxu0 %vm1328_vm6, %v4155_v29 }
 0x2e8   : > { %3214 = vmatmul.msk.f32.gmra.mxu2 %vm1328_vm6, %v1893_v42  ;;  %3255 = vmatmul.msk.f32.gmra.mxu3 %vm1328_vm6, %v4578_v16 }
 0x2e9   : > { %v2405_v33 = vadd.f32 %v4492_v58, %v2124_v19  ;;  %3300 = vmatmul.msk.f32.gmra.mxu1 %vm1205_vm3, %v2751_v60  ;;  %v804_v18 = vpop.permute.xlu1 %803  ;;  %v964_v12 = vpop.permute.xlu2 %963 }
 0x2ea   : > { %v1245_v20 = vsel %vm1205_vm3, %v1204_v0, %v804_v18 }
 0x2eb   : > { %v2686_v49 = vadd.f32 %v2608_v21, %v2405_v33  ;;  %v2049_v30 = vpop.f32.mrf.mxu2  ;;  %v1286_v55 = vsel %vm1246_vm4, %v1245_v20, %v964_v12 }
 0x2ec   : > { %v1800_v57 = vpop.f32.mrf.mxu1  ;;  %v2611_v13 = vpop.f32.mrf.mxu0 }
 0x2ed   : > { %v2720_v61 = vadd.f32 %v4441_v17, %v2686_v49  ;;  %v1801_v39 = vadd.f32 %v1800_v57, %v4338_v24  ;;  %v1124_v21 = vpop.permute.xlu0 %1123 }
 0x2ee   : > { %v1327_v24 = vsel %vm1287_vm5, %v1286_v55, %v1124_v21 }
 0x2ef   : > { %v2752_v46 = vmax.f32 %v2720_v61, 0.0  ;;  %v2125_v58 = vadd.f32 %v2049_v30, %v1801_v39  ;;  %3286 = vmatmul.msk.f32.gmra.mxu0 %vm1328_vm6, %v4525_v9  ;;  %1368 = vst.msk [vmem:[#allocation3 + $0x138] sm:$0xff] %vm1328_vm6, %v1327_v24 }
 0x2f0   : > { %3215 = vmatmul.msk.f32.gmra.mxu2 %vm1328_vm6, %v1894_v41  ;;  %v2459_v41 = vld [vmem:[#allocation3 + $0x130] sm:$0xff] }
 0x2f1   : > { %v2406_v23 = vadd.f32 %v4511_v45, %v2125_v58  ;;  %3301 = vmatmul.msk.f32.gmra.mxu1 %vm1205_vm3, %v2752_v46  ;;  %v2345_v45 = vpop.f32.mrf.mxu3 }
 0x2f3   : > { %v2687_v51 = vadd.f32 %v2611_v13, %v2406_v23  ;;  %v2052_v15 = vpop.f32.mrf.mxu2 }
 0x2f4   : > { %v1803_v31 = vpop.f32.mrf.mxu1  ;;  %v2614_v6 = vpop.f32.mrf.mxu0 }
 0x2f5   : > { %v2721_v4 = vadd.f32 %v4441_v17, %v2687_v51  ;;  %v1804_v59 = vadd.f32 %v1803_v31, %v4355_v43 }
 0x2f6   : > { %v2460_v31 = vld [vmem:[#allocation3 + $0x138] sm:$0xff] }
 0x2f7   : > { %v2753_v60 = vmax.f32 %v2721_v4, 0.0  ;;  %v2126_v19 = vadd.f32 %v2052_v15, %v1804_v59  ;;  %3287 = vmatmul.msk.f32.gmra.mxu0 %vm1328_vm6, %v4544_v38 }
 0x2f8   : > { %3216 = vmatmul.msk.f32.gmra.mxu2 %vm1328_vm6, %v4123_v5 }
 0x2f9   : > { %v2407_v42 = vadd.f32 %v4537_v10, %v2126_v19  ;;  %3302 = vmatmul.msk.f32.gmra.mxu1 %vm1205_vm3, %v2753_v60  ;;  %v2348_v10 = vpop.f32.mrf.mxu3 }
 0x2fb   : > { %v2688_v37 = vadd.f32 %v2614_v6, %v2407_v42  ;;  %v2055_v22 = vpop.f32.mrf.mxu2 }
 0x2fc   : > { %v1806_v33 = vpop.f32.mrf.mxu1  ;;  %v2617_v49 = vpop.f32.mrf.mxu0 }
 0x2fd   : > { %v2722_v30 = vadd.f32 %v4441_v17, %v2688_v37  ;;  %v1807_v43 = vadd.f32 %v1806_v33, %v4374_v36 }
 0x2ff   : > { %v2754_v57 = vmax.f32 %v2722_v30, 0.0  ;;  %v2127_v13 = vadd.f32 %v2055_v22, %v1807_v43  ;;  %3288 = vmatmul.msk.f32.gmra.mxu0 %vm1328_vm6, %v4560_v1 }
 0x300   : > { %3217 = vmatmul.msk.f32.gmra.mxu2 %vm1328_vm6, %v4155_v29 }
 0x301   : > { %v2408_v5 = vadd.f32 %v4554_v40, %v2127_v13  ;;  %3303 = vmatmul.msk.f32.gmra.mxu1 %vm1205_vm3, %v2754_v57  ;;  %v2351_v55 = vpop.f32.mrf.mxu3 }
 0x303   : > { %v2689_v32 = vadd.f32 %v2617_v49, %v2408_v5  ;;  %v2058_v61 = vpop.f32.mrf.mxu2 }
 0x304   : > { %v1809_v39 = vpop.f32.mrf.mxu1  ;;  %v2620_v0 = vpop.f32.mrf.mxu0 }
 0x305   : > { %v2723_v18 = vadd.f32 %v4441_v17, %v2689_v32  ;;  %v1810_v36 = vadd.f32 %v1809_v39, %v4392_v7 }
 0x307   : > { %v2755_v20 = vmax.f32 %v2723_v18, 0.0  ;;  %v2128_v12 = vadd.f32 %v2058_v61, %v1810_v36  ;;  %3289 = vmatmul.msk.f32.gmra.mxu0 %vm1328_vm6, %v4578_v16 }
 0x308   : > { %3218 = vmatmul.msk.f32.gmra.mxu2 %vm1328_vm6, %v4525_v9 }
 0x309   : > { %v2409_v29 = vadd.f32 %v4572_v28, %v2128_v12  ;;  %3304 = vmatmul.msk.f32.gmra.mxu1 %vm1205_vm3, %v2755_v20 }
 0x30b   : > { %v2690_v40 = vadd.f32 %v2620_v0, %v2409_v29  ;;  %v2061_v1 = vpop.f32.mrf.mxu2 }
 0x30c   : > { %v1812_v46 = vpop.f32.mrf.mxu1  ;;  %v2623_v58 = vpop.f32.mrf.mxu0 }
 0x30d   : > { %v2724_v7 = vadd.f32 %v4441_v17, %v2690_v40  ;;  %v1813_v21 = vadd.f32 %v1812_v46, %v4409_v11  ;;  %v2354_v11 = vpop.f32.mrf.mxu3 }
 0x30f   : > { %v2756_v24 = vmax.f32 %v2724_v7, 0.0  ;;  %v2129_v23 = vadd.f32 %v2061_v1, %v1813_v21  ;;  %3290 = vmatmul.msk.f32.gmra.mxu0 %vm1328_vm6, %v2459_v41  ;;  %v1828_v7 = vadd.f32 %v4146_v25, %v4216_v8  ;;  %v1831_v25 = vadd.f32 %v4163_v35, %v4230_v14 }
 0x310   : > { %3219 = vmatmul.msk.f32.gmra.mxu2 %vm1328_vm6, %v4544_v38  ;;  %v1819_v38 = vadd.f32 %v4102_v44, %v4175_v52  ;;  %v1822_v44 = vadd.f32 %v4112_v53, %v4190_v63  ;;  %v1825_v53 = vadd.f32 %v4125_v62, %v4203_v50  ;;  %v1834_v35 = vadd.f32 %v4177_v54, %v4246_v26 }
 0x311   : > { %v2410_v9 = vadd.f32 %v2342_v48, %v2129_v23  ;;  %3305 = vmatmul.msk.f32.gmra.mxu1 %vm1205_vm3, %v2756_v24  ;;  %v1837_v54 = vadd.f32 %v4192_v56, %v4261_v34  ;;  %v1840_v56 = vadd.f32 %v4205_v3, %v4279_v47  ;;  %v4830_v3 = vld [vmem:[#allocation4_spill] sm:$0xff] }
 0x312   : > { %v1843_v47 = vadd.f32 %v4830_v3, %v4298_v2  ;;  %v4832_v2 = vld [vmem:[#allocation5_spill] sm:$0xff] }
 0x313   : > { %v2691_v28 = vadd.f32 %v2623_v58, %v2410_v9  ;;  %v2064_v16 = vpop.f32.mrf.mxu2 }
 0x314   : > { %v1815_v51 = vpop.f32.mrf.mxu1  ;;  %v2626_v15 = vpop.f32.mrf.mxu0 }
 0x315   : > { %v2725_v6 = vadd.f32 %v4441_v17, %v2691_v28  ;;  %v1816_v4 = vadd.f32 %v1815_v51, %v4424_v27  ;;  %v2357_v43 = vpop.f32.mrf.mxu3 }
 0x317   : > { %v2757_v59 = vmax.f32 %v2725_v6, 0.0  ;;  %v2130_v60 = vadd.f32 %v2064_v16, %v1816_v4  ;;  %3291 = vmatmul.msk.f32.gmra.mxu0 %vm1328_vm6, %v2460_v31 }
 0x319   : > { %v2411_v19 = vadd.f32 %v2345_v45, %v2130_v60  ;;  %3306 = vmatmul.msk.f32.gmra.mxu1 %vm1205_vm3, %v2757_v59  ;;  %v4642_v45 = vld [vmem:[%s4814_s3 + $0x1] ss:$0 sm:$0xff] }
 0x31b   : > { %v2692_v48 = vadd.f32 %v2626_v15, %v2411_v19  ;;  %v2067_v42 = vpop.f32.mrf.mxu2 }
 0x31c   : > { %v2131_v37 = vadd.f32 %v2067_v42, %v1819_v38  ;;  %v2629_v22 = vpop.f32.mrf.mxu0 }
 0x31d   : > { %v2726_v33 = vadd.f32 %v4441_v17, %v2692_v48  ;;  %v2360_v63 = vpop.f32.mrf.mxu3 }
 0x31e   : > { %v2412_v49 = vadd.f32 %v2348_v10, %v2131_v37 }
 0x31f   : > { %v2758_v27 = vmax.f32 %v2726_v33, 0.0 }
 0x320   : > { %v2693_v30 = vadd.f32 %v2629_v22, %v2412_v49 }
 0x321   : > { %3307 = vmatmul.msk.f32.gmra.mxu1 %vm1205_vm3, %v2758_v27 }
 0x322   : > { %v2727_v52 = vadd.f32 %v4441_v17, %v2693_v30 }
 0x323   : > { %v2070_v57 = vpop.f32.mrf.mxu2  ;;  %v2891_v5 = vpop.f32.mrf.mxu1 }
 0x324   : > { %v2132_v13 = vadd.f32 %v2070_v57, %v1822_v44  ;;  %v2632_v32 = vpop.f32.mrf.mxu0  ;;  %v2892_v10 = vadd.f32 %v4642_v45, %v2891_v5  ;;  %v2759_v39 = vmax.f32 %v2727_v52, 0.0 }
 0x325   : > { %v2363_v23 = vpop.f32.mrf.mxu3 }
 0x326   : > { %v2413_v61 = vadd.f32 %v2351_v55, %v2132_v13  ;;  %v2987_v0 = vmax.f32 %v2892_v10, 0.0 }
 0x328   : > { %v2694_v18 = vadd.f32 %v2632_v32, %v2413_v61  ;;  %3019 = vst.msk [vmem:[%s4653_s14] sm:$0xff] %vm1205_vm3, %v2987_v0 }
 0x329   : > { %3308 = vmatmul.msk.f32.gmra.mxu1 %vm1205_vm3, %v2759_v39 }
 0x32a   : > { %v2728_v36 = vadd.f32 %v4441_v17, %v2694_v18 }
 0x32b   : > { %v2073_v20 = vpop.f32.mrf.mxu2 }
 0x32c   : > { %v2133_v12 = vadd.f32 %v2073_v20, %v1825_v53  ;;  %v2635_v29 = vpop.f32.mrf.mxu0  ;;  %v2760_v46 = vmax.f32 %v2728_v36, 0.0 }
 0x32d   : > { %v2366_v19 = vpop.f32.mrf.mxu3 }
 0x32e   : > { %v2414_v40 = vadd.f32 %v2354_v11, %v2133_v12  ;;  %v2894_v1 = vpop.f32.mrf.mxu1 }
 0x32f   : > { %v2895_v58 = vadd.f32 %v4642_v45, %v2894_v1 }
 0x330   : > { %v2695_v41 = vadd.f32 %v2635_v29, %v2414_v40 }
 0x331   : > { %v2988_v55 = vmax.f32 %v2895_v58, 0.0  ;;  %3309 = vmatmul.msk.f32.gmra.mxu1 %vm1205_vm3, %v2760_v46 }
 0x332   : > { %v2729_v62 = vadd.f32 %v4441_v17, %v2695_v41 }
 0x333   : > { %3020 = vst.msk [vmem:[%s4653_s14 + $0x8] sm:$0xff] %vm1205_vm3, %v2988_v55  ;;  %v2076_v50 = vpop.f32.mrf.mxu2 }
 0x334   : > { %v2134_v21 = vadd.f32 %v2076_v50, %v1828_v7  ;;  %v2638_v24 = vpop.f32.mrf.mxu0  ;;  %v2761_v16 = vmax.f32 %v2729_v62, 0.0 }
 0x335   : > { %v2369_v57 = vpop.f32.mrf.mxu3 }
 0x336   : > { %v2415_v9 = vadd.f32 %v2357_v43, %v2134_v21  ;;  %v2897_v28 = vpop.f32.mrf.mxu1 }
 0x337   : > { %v2898_v51 = vadd.f32 %v4642_v45, %v2897_v28 }
 0x338   : > { %v2696_v15 = vadd.f32 %v2638_v24, %v2415_v9 }
 0x339   : > { %v2989_v31 = vmax.f32 %v2898_v51, 0.0  ;;  %3310 = vmatmul.msk.f32.gmra.mxu1 %vm1205_vm3, %v2761_v16 }
 0x33a   : > { %v2730_v8 = vadd.f32 %v4441_v17, %v2696_v15 }
 0x33b   : > { %3021 = vst.msk [vmem:[%s4653_s14 + $0x10] sm:$0xff] %vm1205_vm3, %v2989_v31  ;;  %v2079_v6 = vpop.f32.mrf.mxu2  ;;  %v4831_v31 = vld [vmem:[#allocation10_spill] sm:$0xff] }
 0x33c   : > { %v2135_v4 = vadd.f32 %v2079_v6, %v1831_v25  ;;  %v2641_v11 = vpop.f32.mrf.mxu0  ;;  %v2762_v38 = vmax.f32 %v2730_v8, 0.0  ;;  %v1846_v25 = vadd.f32 %v4832_v2, %v4831_v31 }
 0x33d   : > { %v2372_v34 = vpop.f32.mrf.mxu3 }
 0x33e   : > { %v2416_v59 = vadd.f32 %v2360_v63, %v2135_v4  ;;  %v2900_v60 = vpop.f32.mrf.mxu1 }
 0x33f   : > { %v2901_v48 = vadd.f32 %v4642_v45, %v2900_v60 }
 0x340   : > { %v2697_v42 = vadd.f32 %v2641_v11, %v2416_v59 }
 0x341   : > { %v2990_v37 = vmax.f32 %v2901_v48, 0.0  ;;  %3311 = vmatmul.msk.f32.gmra.mxu1 %vm1205_vm3, %v2762_v38 }
 0x342   : > { %v2731_v14 = vadd.f32 %v4441_v17, %v2697_v42 }
 0x343   : > { %3022 = vst.msk [vmem:[%s4653_s14 + $0x18] sm:$0xff] %vm1205_vm3, %v2990_v37  ;;  %v2082_v22 = vpop.f32.mrf.mxu2 }
 0x344   : > { %v2136_v33 = vadd.f32 %v2082_v22, %v1834_v35  ;;  %v2644_v49 = vpop.f32.mrf.mxu0  ;;  %v2763_v43 = vmax.f32 %v2731_v14, 0.0  ;;  %v4833_v35 = vld [vmem:[#allocation12_spill] sm:$0xff]  ;;  %v4834_v14 = vld [vmem:[#allocation6_spill] sm:$0xff] }
 0x345   : > { %v2375_v24 = vpop.f32.mrf.mxu3  ;;  %v1849_v22 = vadd.f32 %v4834_v14, %v4833_v35 }
 0x346   : > { %v2417_v27 = vadd.f32 %v2363_v23, %v2136_v33  ;;  %v2903_v30 = vpop.f32.mrf.mxu1 }
 0x347   : > { %v2904_v44 = vadd.f32 %v4642_v45, %v2903_v30 }
 0x348   : > { %v2698_v52 = vadd.f32 %v2644_v49, %v2417_v27 }
 0x349   : > { %v2991_v13 = vmax.f32 %v2904_v44, 0.0  ;;  %3312 = vmatmul.msk.f32.gmra.mxu1 %vm1205_vm3, %v2763_v43 }
 0x34a   : > { %v2732_v26 = vadd.f32 %v4441_v17, %v2698_v52 }
 0x34b   : > { %3023 = vst.msk [vmem:[%s4653_s14 + $0x20] sm:$0xff] %vm1205_vm3, %v2991_v13  ;;  %v2085_v5 = vpop.f32.mrf.mxu2 }
 0x34c   : > { %v2137_v32 = vadd.f32 %v2085_v5, %v1837_v54  ;;  %v2647_v10 = vpop.f32.mrf.mxu0  ;;  %v2764_v0 = vmax.f32 %v2732_v26, 0.0  ;;  %v4835_v5 = vld [vmem:[#allocation13_spill] sm:$0xff] }
 0x34e   : > { %v2418_v61 = vadd.f32 %v2366_v19, %v2137_v32  ;;  %v2906_v39 = vpop.f32.mrf.mxu1  ;;  %v2378_v19 = vpop.f32.mrf.mxu3  ;;  %v4836_v32 = vld [vmem:[#allocation7_spill] sm:$0xff] }
 0x34f   : > { %v2907_v18 = vadd.f32 %v4642_v45, %v2906_v39 }
 0x350   : > { %v2699_v53 = vadd.f32 %v2647_v10, %v2418_v61  ;;  %v1852_v10 = vadd.f32 %v4836_v32, %v4835_v5 }
 0x351   : > { %v2992_v63 = vmax.f32 %v2907_v18, 0.0  ;;  %3313 = vmatmul.msk.f32.gmra.mxu1 %vm1205_vm3, %v2764_v0 }
 0x352   : > { %v2733_v36 = vadd.f32 %v4441_v17, %v2699_v53 }
 0x353   : > { %3024 = vst.msk [vmem:[%s4653_s14 + $0x28] sm:$0xff] %vm1205_vm3, %v2992_v63  ;;  %v2088_v20 = vpop.f32.mrf.mxu2 }
 0x354   : > { %v2138_v12 = vadd.f32 %v2088_v20, %v1840_v56  ;;  %v2650_v29 = vpop.f32.mrf.mxu0  ;;  %v2765_v46 = vmax.f32 %v2733_v36, 0.0 }
 0x356   : > { %v2419_v40 = vadd.f32 %v2369_v57, %v2138_v12  ;;  %v2909_v1 = vpop.f32.mrf.mxu1  ;;  %v2381_v54 = vpop.f32.mrf.mxu3 }
 0x357   : > { %v2910_v58 = vadd.f32 %v4642_v45, %v2909_v1 }
 0x358   : > { %v2700_v41 = vadd.f32 %v2650_v29, %v2419_v40  ;;  %v4837_v29 = vld [vmem:[#allocation14_spill] sm:$0xff]  ;;  %v4838_v40 = vld [vmem:[#allocation8_spill] sm:$0xff] }
 0x359   : > { %v2993_v55 = vmax.f32 %v2910_v58, 0.0  ;;  %3314 = vmatmul.msk.f32.gmra.mxu1 %vm1205_vm3, %v2765_v46  ;;  %v1855_v1 = vadd.f32 %v4838_v40, %v4837_v29 }
 0x35a   : > { %v2734_v7 = vadd.f32 %v4441_v17, %v2700_v41 }
 0x35b   : > { %3025 = vst.msk [vmem:[%s4653_s14 + $0x30] sm:$0xff] %vm1205_vm3, %v2993_v55  ;;  %v2091_v62 = vpop.f32.mrf.mxu2 }
 0x35c   : > { %v2139_v50 = vadd.f32 %v2091_v62, %v1843_v47  ;;  %v2653_v21 = vpop.f32.mrf.mxu0  ;;  %v2766_v28 = vmax.f32 %v2734_v7, 0.0 }
 0x35e   : > { %v2420_v23 = vadd.f32 %v2372_v34, %v2139_v50  ;;  %v2912_v9 = vpop.f32.mrf.mxu1  ;;  %v2384_v20 = vpop.f32.mrf.mxu3 }
 0x35f   : > { %v2913_v16 = vadd.f32 %v4642_v45, %v2912_v9 }
 0x360   : > { %v2701_v51 = vadd.f32 %v2653_v21, %v2420_v23  ;;  %v4840_v23 = vld [vmem:[#allocation9_spill] sm:$0xff] }
 0x361   : > { %v2994_v15 = vmax.f32 %v2913_v16, 0.0  ;;  %3315 = vmatmul.msk.f32.gmra.mxu1 %vm1205_vm3, %v2766_v28 }
 0x362   : > { %v2735_v8 = vadd.f32 %v4441_v17, %v2701_v51 }
 0x363   : > { %3026 = vst.msk [vmem:[%s4653_s14 + $0x38] sm:$0xff] %vm1205_vm3, %v2994_v15  ;;  %v2094_v6 = vpop.f32.mrf.mxu2 }
 0x364   : > { %v2140_v4 = vadd.f32 %v2094_v6, %v1846_v25  ;;  %v2656_v11 = vpop.f32.mrf.mxu0  ;;  %v2767_v38 = vmax.f32 %v2735_v8, 0.0 }
 0x366   : > { %v2421_v59 = vadd.f32 %v2375_v24, %v2140_v4  ;;  %v2915_v60 = vpop.f32.mrf.mxu1  ;;  %v4839_v24 = vld [vmem:[#allocation15_spill] sm:$0xff]  ;;  %v2387_v28 = vpop.f32.mrf.mxu3 }
 0x367   : > { %v2916_v48 = vadd.f32 %v4642_v45, %v2915_v60  ;;  %v1858_v9 = vadd.f32 %v4840_v23, %v4839_v24  ;;  %v4842_v60 = vld [vmem:[#allocation11_spill] sm:$0xff] }
 0x368   : > { %v2702_v42 = vadd.f32 %v2656_v11, %v2421_v59  ;;  %v4841_v59 = vld [vmem:[#allocation16_spill] sm:$0xff] }
 0x369   : > { %v2995_v37 = vmax.f32 %v2916_v48, 0.0  ;;  %3316 = vmatmul.msk.f32.gmra.mxu1 %vm1205_vm3, %v2767_v38 }
 0x36a   : > { %v2736_v33 = vadd.f32 %v4441_v17, %v2702_v42 }
 0x36b   : > { %3027 = vst.msk [vmem:[%s4653_s14 + $0x40] sm:$0xff] %vm1205_vm3, %v2995_v37  ;;  %v2097_v49 = vpop.f32.mrf.mxu2 }
 0x36c   : > { %v2141_v27 = vadd.f32 %v2097_v49, %v1849_v22  ;;  %v2659_v30 = vpop.f32.mrf.mxu0  ;;  %v2768_v52 = vmax.f32 %v2736_v33, 0.0 }
 0x36e   : > { %v2422_v43 = vadd.f32 %v2378_v19, %v2141_v27  ;;  %v2918_v44 = vpop.f32.mrf.mxu1  ;;  %v1861_v19 = vadd.f32 %v4842_v60, %v4841_v59  ;;  %v2390_v37 = vpop.f32.mrf.mxu3 }
 0x36f   : > { %v2919_v57 = vadd.f32 %v4642_v45, %v2918_v44 }
 0x370   : > { %v2703_v13 = vadd.f32 %v2659_v30, %v2422_v43 }
 0x371   : > { %v2996_v26 = vmax.f32 %v2919_v57, 0.0  ;;  %3317 = vmatmul.msk.f32.gmra.mxu1 %vm1205_vm3, %v2768_v52  ;;  %v4843_v52 = vld [vmem:[#allocation17_spill] sm:$0xff] }
 0x372   : > { %v2737_v61 = vadd.f32 %v4441_v17, %v2703_v13 }
 0x373   : > { %3028 = vst.msk [vmem:[%s4653_s14 + $0x48] sm:$0xff] %vm1205_vm3, %v2996_v26  ;;  %v2100_v39 = vpop.f32.mrf.mxu2 }
 0x374   : > { %v2142_v0 = vadd.f32 %v2100_v39, %v1852_v10  ;;  %v2662_v18 = vpop.f32.mrf.mxu0  ;;  %v2769_v56 = vmax.f32 %v2737_v61, 0.0 }
 0x376   : > { %v2423_v53 = vadd.f32 %v2381_v54, %v2142_v0  ;;  %v2921_v63 = vpop.f32.mrf.mxu1  ;;  %v2393_v13 = vpop.f32.mrf.mxu3 }
 0x377   : > { %v2922_v34 = vadd.f32 %v4642_v45, %v2921_v63 }
 0x378   : > { %v2704_v36 = vadd.f32 %v2662_v18, %v2423_v53 }
 0x379   : > { %v2997_v12 = vmax.f32 %v2922_v34, 0.0  ;;  %3318 = vmatmul.msk.f32.gmra.mxu1 %vm1205_vm3, %v2769_v56 }
 0x37a   : > { %v2738_v46 = vadd.f32 %v4441_v17, %v2704_v36 }
 0x37b   : > { %3029 = vst.msk [vmem:[%s4653_s14 + $0x50] sm:$0xff] %vm1205_vm3, %v2997_v12  ;;  %v2103_v58 = vpop.f32.mrf.mxu2 }
 0x37c   : > { %v2143_v41 = vadd.f32 %v2103_v58, %v1855_v1  ;;  %v2665_v55 = vpop.f32.mrf.mxu0  ;;  %v2770_v7 = vmax.f32 %v2738_v46, 0.0 }
 0x37e   : > { %v2424_v3 = vadd.f32 %v2384_v20, %v2143_v41  ;;  %v2924_v47 = vpop.f32.mrf.mxu1 }
 0x37f   : > { %v2925_v62 = vadd.f32 %v4642_v45, %v2924_v47 }
 0x380   : > { %v2705_v50 = vadd.f32 %v2665_v55, %v2424_v3 }
 0x381   : > { %v2998_v21 = vmax.f32 %v2925_v62, 0.0  ;;  %3319 = vmatmul.msk.f32.gmra.mxu1 %vm1205_vm3, %v2770_v7 }
 0x382   : > { %v2739_v16 = vadd.f32 %v4441_v17, %v2705_v50 }
 0x383   : > { %3030 = vst.msk [vmem:[%s4653_s14 + $0x58] sm:$0xff] %vm1205_vm3, %v2998_v21  ;;  %v2106_v51 = vpop.f32.mrf.mxu2 }
 0x384   : > { %v2144_v15 = vadd.f32 %v2106_v51, %v1858_v9  ;;  %v2668_v31 = vpop.f32.mrf.mxu0  ;;  %v2771_v8 = vmax.f32 %v2739_v16, 0.0 }
 0x386   : > { %v2425_v2 = vadd.f32 %v2387_v28, %v2144_v15  ;;  %v2927_v25 = vpop.f32.mrf.mxu1 }
 0x387   : > { %v2928_v6 = vadd.f32 %v4642_v45, %v2927_v25 }
 0x388   : > { %v2706_v4 = vadd.f32 %v2668_v31, %v2425_v2 }
 0x389   : > { %v2999_v11 = vmax.f32 %v2928_v6, 0.0  ;;  %3320 = vmatmul.msk.f32.gmra.mxu1 %vm1205_vm3, %v2771_v8 }
 0x38a   : > { %v2740_v38 = vadd.f32 %v4441_v17, %v2706_v4 }
 0x38b   : > { %3031 = vst.msk [vmem:[%s4653_s14 + $0x60] sm:$0xff] %vm1205_vm3, %v2999_v11  ;;  %v2109_v48 = vpop.f32.mrf.mxu2 }
 0x38c   : > { %v2145_v42 = vadd.f32 %v2109_v48, %v1861_v19  ;;  %v2671_v35 = vpop.f32.mrf.mxu0  ;;  %v2772_v33 = vmax.f32 %v2740_v38, 0.0 }
 0x38e   : > { %v2426_v14 = vadd.f32 %v2390_v37, %v2145_v42  ;;  %v2930_v22 = vpop.f32.mrf.mxu1 }
 0x38f   : > { %v2931_v49 = vadd.f32 %v4642_v45, %v2930_v22 }
 0x390   : > { %v2707_v27 = vadd.f32 %v2671_v35, %v2426_v14 }
 0x391   : > { %v3000_v30 = vmax.f32 %v2931_v49, 0.0  ;;  %3321 = vmatmul.msk.f32.gmra.mxu1 %vm1205_vm3, %v2772_v33 }
 0x392   : > { %v2741_v43 = vadd.f32 %v4441_v17, %v2707_v27 }
 0x393   : > { %3032 = vst.msk [vmem:[%s4653_s14 + $0x68] sm:$0xff] %vm1205_vm3, %v3000_v30  ;;  %v2112_v44 = vpop.f32.mrf.mxu2 }
 0x394   : > { %v2146_v57 = vadd.f32 %v2112_v44, %v4843_v52  ;;  %v2773_v5 = vmax.f32 %v2741_v43, 0.0  ;;  %v2674_v32 = vpop.f32.mrf.mxu0 }
 0x396   : > { %v2427_v54 = vadd.f32 %v2393_v13, %v2146_v57  ;;  %v2933_v26 = vpop.f32.mrf.mxu1 }
 0x397   : > { %v2934_v10 = vadd.f32 %v4642_v45, %v2933_v26 }
 0x398   : > { %v2708_v61 = vadd.f32 %v2674_v32, %v2427_v54 }
 0x399   : > { %v3001_v39 = vmax.f32 %v2934_v10, 0.0  ;;  %3322 = vmatmul.msk.f32.gmra.mxu1 %vm1205_vm3, %v2773_v5 }
 0x39a   : > { %v2742_v0 = vadd.f32 %v4441_v17, %v2708_v61 }
 0x39b   : > { %3033 = vst.msk [vmem:[%s4653_s14 + $0x70] sm:$0xff] %vm1205_vm3, %v3001_v39 }
 0x39c   : > { %v2774_v53 = vmax.f32 %v2742_v0, 0.0 }
 0x39e   : > { %v2936_v18 = vpop.f32.mrf.mxu1 }
 0x39f   : > { %v2937_v63 = vadd.f32 %v4642_v45, %v2936_v18 }
 0x3a1   : > { %v3002_v56 = vmax.f32 %v2937_v63, 0.0  ;;  %3323 = vmatmul.msk.f32.gmra.mxu1 %vm1205_vm3, %v2774_v53 }
 0x3a3   : > { %3034 = vst.msk [vmem:[%s4653_s14 + $0x78] sm:$0xff] %vm1205_vm3, %v3002_v56 }
 0x3a6   : > { %v2939_v34 = vpop.f32.mrf.mxu1 }
 0x3a7   : > { %v2940_v36 = vadd.f32 %v4642_v45, %v2939_v34 }
 0x3a9   : > { %v3003_v20 = vmax.f32 %v2940_v36, 0.0 }
 0x3ab   : > { %3035 = vst.msk [vmem:[%s4653_s14 + $0x80] sm:$0xff] %vm1205_vm3, %v3003_v20 }
 0x3ae   : > { %v2942_v17 = vpop.f32.mrf.mxu1 }
 0x3af   : > { %v2943_v12 = vadd.f32 %v4642_v45, %v2942_v17 }
 0x3b1   : > { %v3004_v29 = vmax.f32 %v2943_v12, 0.0 }
 0x3b3   : > { %3036 = vst.msk [vmem:[%s4653_s14 + $0x88] sm:$0xff] %vm1205_vm3, %v3004_v29 }
 0x3b6   : > { %v2945_v40 = vpop.f32.mrf.mxu1 }
 0x3b7   : > { %v2946_v1 = vadd.f32 %v4642_v45, %v2945_v40 }
 0x3b9   : > { %v3005_v46 = vmax.f32 %v2946_v1, 0.0 }
 0x3bb   : > { %3037 = vst.msk [vmem:[%s4653_s14 + $0x90] sm:$0xff] %vm1205_vm3, %v3005_v46 }
 0x3be   : > { %v2948_v58 = vpop.f32.mrf.mxu1 }
 0x3bf   : > { %v2949_v41 = vadd.f32 %v4642_v45, %v2948_v58 }
 0x3c1   : > { %v3006_v55 = vmax.f32 %v2949_v41, 0.0 }
 0x3c3   : > { %3038 = vst.msk [vmem:[%s4653_s14 + $0x98] sm:$0xff] %vm1205_vm3, %v3006_v55 }
 0x3c6   : > { %v2951_v3 = vpop.f32.mrf.mxu1 }
 0x3c7   : > { %v2952_v47 = vadd.f32 %v4642_v45, %v2951_v3 }
 0x3c9   : > { %v3007_v7 = vmax.f32 %v2952_v47, 0.0 }
 0x3cb   : > { %3039 = vst.msk [vmem:[%s4653_s14 + $0xa0] sm:$0xff] %vm1205_vm3, %v3007_v7 }
 0x3ce   : > { %v2954_v62 = vpop.f32.mrf.mxu1 }
 0x3cf   : > { %v2955_v50 = vadd.f32 %v4642_v45, %v2954_v62 }
 0x3d1   : > { %v3008_v21 = vmax.f32 %v2955_v50, 0.0 }
 0x3d3   : > { %3040 = vst.msk [vmem:[%s4653_s14 + $0xa8] sm:$0xff] %vm1205_vm3, %v3008_v21 }
 0x3d6   : > { %v2957_v24 = vpop.f32.mrf.mxu1 }
 0x3d7   : > { %v2958_v23 = vadd.f32 %v4642_v45, %v2957_v24 }
 0x3d9   : > { %v3009_v9 = vmax.f32 %v2958_v23, 0.0 }
 0x3db   : > { %3041 = vst.msk [vmem:[%s4653_s14 + $0xb0] sm:$0xff] %vm1205_vm3, %v3009_v9 }
 0x3de   : > { %v2960_v28 = vpop.f32.mrf.mxu1 }
 0x3df   : > { %v2961_v16 = vadd.f32 %v4642_v45, %v2960_v28 }
 0x3e1   : > { %v3010_v51 = vmax.f32 %v2961_v16, 0.0 }
 0x3e3   : > { %3042 = vst.msk [vmem:[%s4653_s14 + $0xb8] sm:$0xff] %vm1205_vm3, %v3010_v51 }
 0x3e6   : > { %v2963_v15 = vpop.f32.mrf.mxu1 }
 0x3e7   : > { %v2964_v31 = vadd.f32 %v4642_v45, %v2963_v15 }
 0x3e9   : > { %v3011_v2 = vmax.f32 %v2964_v31, 0.0 }
 0x3eb   : > { %3043 = vst.msk [vmem:[%s4653_s14 + $0xc0] sm:$0xff] %vm1205_vm3, %v3011_v2 }
 0x3ee   : > { %v2966_v25 = vpop.f32.mrf.mxu1 }
 0x3ef   : > { %v2967_v8 = vadd.f32 %v4642_v45, %v2966_v25 }
 0x3f1   : > { %v3012_v6 = vmax.f32 %v2967_v8, 0.0 }
 0x3f3   : > { %3044 = vst.msk [vmem:[%s4653_s14 + $0xc8] sm:$0xff] %vm1205_vm3, %v3012_v6 }
 0x3f6   : > { %v2969_v4 = vpop.f32.mrf.mxu1 }
 0x3f7   : > { %v2970_v11 = vadd.f32 %v4642_v45, %v2969_v4 }
 0x3f9   : > { %v3013_v59 = vmax.f32 %v2970_v11, 0.0 }
 0x3fb   : > { %3045 = vst.msk [vmem:[%s4653_s14 + $0xd0] sm:$0xff] %vm1205_vm3, %v3013_v59 }
 0x3fe   : > { %v2972_v60 = vpop.f32.mrf.mxu1 }
 0x3ff   : > { %v2973_v19 = vadd.f32 %v4642_v45, %v2972_v60 }
 0x401   : > { %v3014_v38 = vmax.f32 %v2973_v19, 0.0 }
 0x403   : > { %3046 = vst.msk [vmem:[%s4653_s14 + $0xd8] sm:$0xff] %vm1205_vm3, %v3014_v38 }
 0x406   : > { %v2975_v48 = vpop.f32.mrf.mxu1 }
 0x407   : > { %v2976_v42 = vadd.f32 %v4642_v45, %v2975_v48 }
 0x409   : > { %v3015_v37 = vmax.f32 %v2976_v42, 0.0 }
 0x40b   : > { %3047 = vst.msk [vmem:[%s4653_s14 + $0xe0] sm:$0xff] %vm1205_vm3, %v3015_v37 }
 0x40e   : > { %v2978_v35 = vpop.f32.mrf.mxu1 }
 0x40f   : > { %v2979_v14 = vadd.f32 %v4642_v45, %v2978_v35 }
 0x411   : > { %v3016_v22 = vmax.f32 %v2979_v14, 0.0 }
 0x413   : > { %3048 = vst.msk [vmem:[%s4653_s14 + $0xe8] sm:$0xff] %vm1205_vm3, %v3016_v22 }
 0x416   : > { %v2981_v33 = vpop.f32.mrf.mxu1 }
 0x417   : > { %v2982_v49 = vadd.f32 %v4642_v45, %v2981_v33 }
 0x419   : > { %v3017_v27 = vmax.f32 %v2982_v49, 0.0 }
 0x41b   : > { %3049 = vst.msk [vmem:[%s4653_s14 + $0xf0] sm:$0xff] %vm1205_vm3, %v3017_v27 }
 0x41e   : > { %v2984_v30 = vpop.f32.mrf.mxu1 }
 0x41f   : > { %v2985_v43 = vadd.f32 %v4642_v45, %v2984_v30 }
 0x421   : > { %v3018_v44 = vmax.f32 %v2985_v43, 0.0 }
 0x423   : > { %3050 = vst.msk [vmem:[%s4653_s14 + $0xf8] sm:$0xff] %vm1205_vm3, %v3018_v44 }
 0x424 PF: > { %s14_s15 = sadd.s32 1, %s3355_s15  }
 0x425   : > { %p11_p4 = scmp.ge.s32.totalorder %s14_s15, 4  }
 0x427   :  { %13 = sbr.rel (!%p11_p4) target bundleno = 1 (0x1), region = 75 }

</bundles_post_ra>
